<compile_context>
chip_gen: v7x
topology: tpu7x:2x2x1
jax: 0.10.0
libtpu: 0.0.40
codegen_flags: <defaults>
</compile_context>

<pallas_src>
import jax
import jax.numpy as jnp
from jax.experimental import pallas as pl
from jax.experimental.pallas import tpu as pltpu


def _round_up(v, m):
    return ((v + m - 1) // m) * m


def ffn_kernel(x_ref, w1_ref, b1_ref, w2_ref, b2_ref, o_ref):
    # Downcast the activation tile in-kernel (cheap VPU work, hidden under MXU).
    x_bf = x_ref[...].astype(jnp.bfloat16)
    # dense: x @ W1 (bf16 operands, f32 MXU accumulation)
    h = jnp.dot(x_bf, w1_ref[...], preferred_element_type=jnp.float32)
    # bias + ReLU in f32 on the VPU
    h = jnp.maximum(h + b1_ref[...], 0.0)
    # dropout: eval mode -> identity.
    # classifier: downcast only the matmul operand, accumulate in f32.
    out = jnp.dot(h.astype(jnp.bfloat16), w2_ref[...],
                  preferred_element_type=jnp.float32)
    o_ref[...] = (out + b2_ref[...]).astype(o_ref.dtype)


def prepare_params(w1, b1, w2, b2):
    """One-time parameter prep (call once, reuse across forward calls).

    w1: (D_in, D_hid); b1: (D_hid,) or (1, D_hid)
    w2: (D_hid, n_cls); b2: (n_cls,) or (1, n_cls)
    Weights are stored transposed vs. PyTorch's [out, in] so the kernel does x @ W.
    """
    n_cls = w2.shape[1]
    n_cls_pad = max(128, pl.cdiv(n_cls, 128) * 128)  # lane-dense output columns
    if n_cls_pad != n_cls:
        w2 = jnp.pad(w2, ((0, 0), (0, n_cls_pad - n_cls)))
        b2 = jnp.pad(b2.reshape(1, -1), ((0, 0), (0, n_cls_pad - n_cls)))
    return {
        "w1": w1.astype(jnp.bfloat16),
        "b1": b1.reshape(1, -1).astype(jnp.float32),
        "w2": w2.astype(jnp.bfloat16),
        "b2": b2.reshape(1, -1).astype(jnp.float32),
        "n_cls": n_cls,
    }


def ffn_forward(x, params, *, tile_b=None):
    """x: (B, D_in) f32; params: output of prepare_params(). Returns (B, n_cls) f32."""
    w1, b1, w2, b2 = params["w1"], params["b1"], params["w2"], params["b2"]
    n_cls = params["n_cls"]
    B, D_in = x.shape
    D_hid = w1.shape[1]
    n_cls_pad = w2.shape[1]

    # Batch-tile selection:
    #   * small B: tile = round_up(B, 16)  (no wasted MXU work / DMA on pad rows)
    #   * large B: default 512 rows (~9 MiB VMEM incl. resident weights -> fits
    #     v5e's 16 MiB scoped default), and keep >= 2 grid steps so the parallel
    #     batch axis can feed both v7x TensorCores.
    if tile_b is None:
        tile_b = 512
    if B >= 32:
        tile_b = max(16, min(tile_b, _round_up(pl.cdiv(B, 2), 16)))
    else:
        tile_b = _round_up(max(B, 1), 16)

    # Pad batch up to a multiple of tile_b (zeros); sliced off after the call.
    B_pad = pl.cdiv(B, tile_b) * tile_b
    if B_pad != B:
        x = jnp.pad(x, ((0, B_pad - B), (0, 0)))

    grid = (B_pad // tile_b,)
    flops = 2 * B_pad * (D_in * D_hid + D_hid * n_cls_pad)
    bytes_accessed = (
        B_pad * D_in * 4            # x (f32, read once)
        + w1.size * 2 + w2.size * 2  # bf16 weights
        + b1.size * 4 + b2.size * 4  # f32 biases
        + B_pad * n_cls_pad * 4      # f32 logits writeback
    )

    resident = dict(pipeline_mode=pl.Buffered(1))  # single-buffer constant operands

    out = pl.pallas_call(
        ffn_kernel,
        out_shape=jax.ShapeDtypeStruct((B_pad, n_cls_pad), jnp.float32),
        grid_spec=pltpu.PrefetchScalarGridSpec(
            num_scalar_prefetch=0,
            grid=grid,
            in_specs=[
                pl.BlockSpec((tile_b, D_in), lambda i: (i, 0)),                  # x tile (f32)
                pl.BlockSpec((D_in, D_hid), lambda i: (0, 0), **resident),       # W1 (bf16, resident)
                pl.BlockSpec((1, D_hid), lambda i: (0, 0), **resident),          # b1 (f32)
                pl.BlockSpec((D_hid, n_cls_pad), lambda i: (0, 0), **resident),  # W2 (bf16, padded)
                pl.BlockSpec((1, n_cls_pad), lambda i: (0, 0), **resident),      # b2 (f32, padded)
            ],
            out_specs=pl.BlockSpec((tile_b, n_cls_pad), lambda i: (i, 0)),
        ),
        compiler_params=pltpu.CompilerParams(
            dimension_semantics=("parallel",),   # batch axis shards across TCs on v7x
            vmem_limit_bytes=32 * 1024 * 1024,   # headroom for big tiles on v5e (16 MiB default)
        ),
        cost_estimate=pl.CostEstimate(
            flops=flops, transcendentals=0, bytes_accessed=bytes_accessed
        ),
    )(x, w1, b1, w2, b2)

    # Drop batch padding and the zero-padded class columns.
    return out[:B, :n_cls]


def init_params(key, dense_input=768, dense_output=1024, num_classes=21):
    """Deterministic init mimicking nn.Linear default (uniform +/- 1/sqrt(fan_in))."""
    k1, k2, k3, k4 = jax.random.split(key, 4)
    bound1 = 1.0 / (dense_input ** 0.5)
    bound2 = 1.0 / (dense_output ** 0.5)
    w1 = jax.random.uniform(k1, (dense_input, dense_output), jnp.float32, -bound1, bound1)
    b1 = jax.random.uniform(k2, (dense_output,), jnp.float32, -bound1, bound1)
    w2 = jax.random.uniform(k3, (dense_output, num_classes), jnp.float32, -bound2, bound2)
    b2 = jax.random.uniform(k4, (num_classes,), jnp.float32, -bound2, bound2)
    return w1, b1, w2, b2


if __name__ == "__main__":
    key = jax.random.PRNGKey(0)
    k_x, k_p = jax.random.split(key)

    B, D_in, D_hid, n_cls = 16, 768, 1024, 21
    x = jax.random.normal(k_x, (B, D_in), jnp.float32)
    w1, b1, w2, b2 = init_params(k_p, D_in, D_hid, n_cls)

    # One-time parameter preparation (bf16 weights, padded classifier).
    params = prepare_params(w1, b1, w2, b2)

    out = ffn_forward(x, params)  # adaptive tile: B=16 -> tile_b=16, no pad rows
    out = jax.block_until_ready(out)

    # Reference in plain f32 JAX (eval-mode dropout == identity). bf16 matmul
    # operands inside the kernel -> loosened tolerance vs the f32 reference.
    ref = jnp.maximum(x @ w1 + b1[None, :], 0.0) @ w2 + b2[None, :]
    assert out.shape == (B, n_cls)
    assert jnp.allclose(out, ref, atol=3e-2, rtol=3e-2), float(jnp.max(jnp.abs(out - ref)))

    print("KERNEL_OK")
</pallas_src>

<mosaic_0001>
module attributes {stable_mosaic.version = 11 : i64} {
  func.func @ffn_kernel(%arg0: i32, %arg1: memref<16x768xf32, #tpu.memory_space<vmem>>, %arg2: memref<768x1024xbf16, #tpu.memory_space<vmem>>, %arg3: memref<1x1024xf32, #tpu.memory_space<vmem>>, %arg4: memref<1024x128xbf16, #tpu.memory_space<vmem>>, %arg5: memref<1x128xf32, #tpu.memory_space<vmem>>, %arg6: memref<16x128xf32, #tpu.memory_space<vmem>>) attributes {dimension_semantics = [#tpu.dimension_semantics<parallel>], iteration_bounds = array<i64: 1>, scalar_prefetch = 0 : i64, scratch_operands = 0 : i64, tpu.core_type = #tpu.core_type<tc>, window_params = [{transform_indices = @transform_0, window_bounds = array<i64: 16, 768>}, {pipeline_mode = #tpu.pipeline_mode<synchronous>, transform_indices = @transform_1, window_bounds = array<i64: 768, 1024>}, {pipeline_mode = #tpu.pipeline_mode<synchronous>, transform_indices = @transform_2, window_bounds = array<i64: 1, 1024>}, {pipeline_mode = #tpu.pipeline_mode<synchronous>, transform_indices = @transform_3, window_bounds = array<i64: 1024, 128>}, {pipeline_mode = #tpu.pipeline_mode<synchronous>, transform_indices = @transform_4, window_bounds = array<i64: 1, 128>}, {transform_indices = @transform_5, window_bounds = array<i64: 16, 128>}]} {
    %c0 = arith.constant 0 : index
    %c0_0 = arith.constant 0 : index
    %0 = vector.load %arg1[%c0, %c0_0] : memref<16x768xf32, #tpu.memory_space<vmem>>, vector<16x768xf32>
    %1 = arith.truncf %0 : vector<16x768xf32> to vector<16x768xbf16>
    %c0_1 = arith.constant 0 : index
    %c0_2 = arith.constant 0 : index
    %2 = vector.load %arg2[%c0_1, %c0_2] : memref<768x1024xbf16, #tpu.memory_space<vmem>>, vector<768x1024xbf16>
    %cst = arith.constant dense<0.000000e+00> : vector<16x1024xf32>
    %3 = tpu.matmul %1, %2, %cst {dimension_numbers = #tpu.dot_dimension_numbers<[1], [0], [0], [1], [0, 0, 1, 1], [], []>} : vector<16x768xbf16>, vector<768x1024xbf16>, vector<16x1024xf32> -> vector<16x1024xf32>
    %c0_3 = arith.constant 0 : index
    %c0_4 = arith.constant 0 : index
    %4 = vector.load %arg3[%c0_3, %c0_4] : memref<1x1024xf32, #tpu.memory_space<vmem>>, vector<1x1024xf32>
    %5 = vector.broadcast %4 : vector<1x1024xf32> to vector<16x1024xf32>
    %6 = arith.addf %3, %5 : vector<16x1024xf32>
    %cst_5 = arith.constant 0.000000e+00 : f32
    %7 = vector.broadcast %cst_5 : f32 to vector<16x1024xf32>
    %8 = arith.maximumf %6, %7 : vector<16x1024xf32>
    %9 = arith.truncf %8 : vector<16x1024xf32> to vector<16x1024xbf16>
    %c0_6 = arith.constant 0 : index
    %c0_7 = arith.constant 0 : index
    %10 = vector.load %arg4[%c0_6, %c0_7] : memref<1024x128xbf16, #tpu.memory_space<vmem>>, vector<1024x128xbf16>
    %cst_8 = arith.constant dense<0.000000e+00> : vector<16x128xf32>
    %11 = tpu.matmul %9, %10, %cst_8 {dimension_numbers = #tpu.dot_dimension_numbers<[1], [0], [0], [1], [0, 0, 1, 1], [], []>} : vector<16x1024xbf16>, vector<1024x128xbf16>, vector<16x128xf32> -> vector<16x128xf32>
    %c0_9 = arith.constant 0 : index
    %c0_10 = arith.constant 0 : index
    %12 = vector.load %arg5[%c0_9, %c0_10] : memref<1x128xf32, #tpu.memory_space<vmem>>, vector<1x128xf32>
    %13 = vector.broadcast %12 : vector<1x128xf32> to vector<16x128xf32>
    %14 = arith.addf %11, %13 : vector<16x128xf32>
    %c0_11 = arith.constant 0 : index
    %c0_12 = arith.constant 0 : index
    %15 = vector.load %arg6[%c0_11, %c0_12] : memref<16x128xf32, #tpu.memory_space<vmem>>, vector<16x128xf32>
    tpu.vector_store %arg6[%c0_11, %c0_12], %14 {strides = array<i32>} : memref<16x128xf32, #tpu.memory_space<vmem>>, vector<16x128xf32>,
    return
  }
  func.func @transform_0(%arg0: i32) -> (i32, i32) {
    %c0_i32 = arith.constant 0 : i32
    %c0_i32_0 = arith.constant 0 : i32
    return %arg0, %c0_i32 : i32, i32
  }
  func.func @transform_1(%arg0: i32) -> (i32, i32) {
    %c0_i32 = arith.constant 0 : i32
    %c0_i32_0 = arith.constant 0 : i32
    %c0_i32_1 = arith.constant 0 : i32
    return %c0_i32, %c0_i32_0 : i32, i32
  }
  func.func @transform_2(%arg0: i32) -> (i32, i32) {
    %c0_i32 = arith.constant 0 : i32
    %c0_i32_0 = arith.constant 0 : i32
    %c0_i32_1 = arith.constant 0 : i32
    return %c0_i32, %c0_i32_0 : i32, i32
  }
  func.func @transform_3(%arg0: i32) -> (i32, i32) {
    %c0_i32 = arith.constant 0 : i32
    %c0_i32_0 = arith.constant 0 : i32
    %c0_i32_1 = arith.constant 0 : i32
    return %c0_i32, %c0_i32_0 : i32, i32
  }
  func.func @transform_4(%arg0: i32) -> (i32, i32) {
    %c0_i32 = arith.constant 0 : i32
    %c0_i32_0 = arith.constant 0 : i32
    %c0_i32_1 = arith.constant 0 : i32
    return %c0_i32, %c0_i32_0 : i32, i32
  }
  func.func @transform_5(%arg0: i32) -> (i32, i32) {
    %c0_i32 = arith.constant 0 : i32
    %c0_i32_0 = arith.constant 0 : i32
    return %arg0, %c0_i32 : i32, i32
  }
}

</mosaic_0001>

<bundles_post_ra>
// kernel: tpu_custom_call.1
= control target key start
LH: loop header
LB: loop body
LE: loop exit
PB: predicated region body
PF: predicated region fallthrough
CT: control target
= control target key end

     0   :  { %10 = vsyncpa [#allocation3], 0  ;;  %s4669_s0 = inlined_call_operand.hbm [shape: f32[16,768], index: 0, kind: input, shape index: {}]   ;;  %s4670_s1 = inlined_call_operand.hbm [shape: bf16[768,1024], index: 1, kind: input, shape index: {}]   ;;  %s4671_s2 = inlined_call_operand.hbm [shape: f32[1,1024], index: 2, kind: input, shape index: {}]   ;;  %s4672_s3 = inlined_call_operand.hbm [shape: bf16[1024,128], index: 3, kind: input, shape index: {}]   ;;  %s4673_s4 = inlined_call_operand.hbm [shape: f32[1,128], index: 4, kind: input, shape index: {}]   ;;  %s4674_s5 = inlined_call_operand.hbm [shape: f32[16,128], index: 5, kind: output, shape index: {}]  }
   0x1   :  { %11 = vsyncpa [#allocation6], 0 }
   0x2   :  { %12 = vsyncpa [#allocation9], 0 }
   0x3   :  { %13 = vsyncpa [#allocation4], 0  ;;  %s4497_s18 = smov [#allocation5]   ;;  %s4357_s22 = scalar_lea.hbm %s4670_s1, 49152 }
   0x4   :  { %s31_s19 = sshll.u32 %s4497_s18, 4  ;;  %p4358_p0 = scmp.ne.s32.totalorder %s4670_s1, %s4357_s22  ;;  %s32_s19 = int_to_ptr.vmem [resolvable:$true] %s31_s19 }
   0x5   :  { %p4361_p1 = scmp.lt.u32.totalorder %s4357_s22, %s4670_s1 }
   0x7   :  { %p4363_p2 = pnand %p4361_p1, %p4358_p0 }
   0x9   :  { %4366 = shalt.err (!%p4363_p2)
}
   0xa   :  { %s4367_s27 = scalar_lea.vmem %s32_s19, 49152  ;;  %p4372_p4 = scmp.lt.s32.totalorder %s32_s19, %s32_s19 }
   0xb   :  { %p4368_p3 = scmp.ne.s32.totalorder %s32_s19, %s4367_s27  ;;  %p4373_p5 = scmp.lt.s32.totalorder %s4367_s27, %s4367_s27 }
   0xd   :  { %p4374_p6 = por %p4373_p5, %p4372_p4 }
   0xf   :  { %p4375_p7 = pnand %p4374_p6, %p4368_p3 }
  0x11   :  { %4378 = shalt.err (!%p4375_p7)
}
  0x12   :  { %s4498_s28 = smov 512   ;;  %s4499_s29 = smov 32  }
  0x13   :  { %37 = dma.hbm_to_vmem [thread:$0]  %s4670_s1, 49152, %s32_s19, [#allocation6], %s4498_s28, %s4498_s28, %s4499_s29  }
  0x14   :  { %s4500_s7 = smov [#allocation8]   ;;  %s4379_s11 = scalar_lea.hbm %s4672_s3, 8192 }
  0x15   :  { %s53_s8 = sshll.u32 %s4500_s7, 4  ;;  %p4380_p8 = scmp.ne.s32.totalorder %s4672_s3, %s4379_s11  ;;  %s54_s8 = int_to_ptr.vmem [resolvable:$true] %s53_s8 }
  0x16   :  { %p4383_p9 = scmp.lt.u32.totalorder %s4379_s11, %s4672_s3 }
  0x18   :  { %p4385_p10 = pnand %p4383_p9, %p4380_p8 }
  0x1a   :  { %4388 = shalt.err (!%p4385_p10)
}
  0x1b   :  { %s4389_s16 = scalar_lea.vmem %s54_s8, 8192  ;;  %p4394_p12 = scmp.lt.s32.totalorder %s54_s8, %s54_s8 }
  0x1c   :  { %p4390_p11 = scmp.ne.s32.totalorder %s54_s8, %s4389_s16  ;;  %p4395_p13 = scmp.lt.s32.totalorder %s4389_s16, %s4389_s16 }
  0x1e   :  { %p4396_p0 = por %p4395_p13, %p4394_p12 }
  0x20   :  { %p4397_p1 = pnand %p4396_p0, %p4390_p11 }
  0x22   :  { %4400 = shalt.err (!%p4397_p1)
}
  0x23   :  { %s4501_s1 = smov 64   ;;  %s4502_s17 = smov 4  }
  0x24   :  { %59 = dma.hbm_to_vmem [thread:$0]  %s4672_s3, 8192, %s54_s8, [#allocation9], %s4501_s1, %s4501_s1, %s4502_s17  }
  0x25   :  { %s4503_s20 = smov [#allocation2]   ;;  %s4401_s24 = scalar_lea.hbm %s4669_s0, 1536 }
  0x26   :  { %s19_s21 = sshll.u32 %s4503_s20, 4  ;;  %p4402_p2 = scmp.ne.s32.totalorder %s4669_s0, %s4401_s24  ;;  %s20_s21 = int_to_ptr.vmem [resolvable:$true] %s19_s21 }
  0x27   :  { %p4405_p3 = scmp.lt.u32.totalorder %s4401_s24, %s4669_s0 }
  0x29   :  { %p4407_p4 = pnand %p4405_p3, %p4402_p2 }
  0x2b   :  { %4410 = shalt.err (!%p4407_p4)
}
  0x2c   :  { %s4411_s29 = scalar_lea.vmem %s20_s21, 1536  ;;  %p4416_p6 = scmp.lt.s32.totalorder %s20_s21, %s20_s21 }
  0x2d   :  { %p4412_p5 = scmp.ne.s32.totalorder %s20_s21, %s4411_s29  ;;  %p4417_p7 = scmp.lt.s32.totalorder %s4411_s29, %s4411_s29 }
  0x2f   :  { %p4418_p8 = por %p4417_p7, %p4416_p6 }
  0x31   :  { %p4419_p9 = pnand %p4418_p8, %p4412_p5 }
  0x33   :  { %4422 = shalt.err (!%p4419_p9)
}
  0x34   :  { %s4504_s3 = smov 768   ;;  %s4505_s30 = smov 48  }
  0x35   :  { %25 = dma.hbm_to_vmem [thread:$0]  %s4669_s0, 1536, %s20_s21, [#allocation3], %s4504_s3, %s4504_s3, %s4505_s30  }
  0x36   :  { %s4506_s8 = smov [#allocation7]   ;;  %s4507_s10 = smov [#allocation10]  }
  0x37   :  { %s44_s9 = sshll.u32 %s4506_s8, 4  ;;  %s66_s11 = sshll.u32 %s4507_s10, 4  ;;  %s45_s9 = int_to_ptr.vmem [resolvable:$true] %s44_s9  ;;  %s67_s11 = int_to_ptr.vmem [resolvable:$true] %s66_s11 }
  0x38   :  { %s4423_s14 = scalar_lea.hbm %s4671_s2, 128 }
  0x39   :  { %p4424_p10 = scmp.ne.s32.totalorder %s4671_s2, %s4423_s14  ;;  %p4427_p11 = scmp.lt.u32.totalorder %s4423_s14, %s4671_s2 }
  0x3b   :  { %p4429_p12 = pnand %p4427_p11, %p4424_p10 }
  0x3d   :  { %4432 = shalt.err (!%p4429_p12)
}
  0x3e   :  { %s4433_s0 = scalar_lea.vmem %s45_s9, 128  ;;  %p4438_p0 = scmp.lt.s32.totalorder %s45_s9, %s45_s9 }
  0x3f   :  { %p4434_p13 = scmp.ne.s32.totalorder %s45_s9, %s4433_s0  ;;  %p4439_p1 = scmp.lt.s32.totalorder %s4433_s0, %s4433_s0 }
  0x41   :  { %p4440_p2 = por %p4439_p1, %p4438_p0 }
  0x43   :  { %p4441_p3 = pnand %p4440_p2, %p4434_p13 }
  0x45   :  { %4444 = shalt.err (!%p4441_p3)
}
  0x46   :  { %47 = dma.hbm_to_vmem [thread:$0]  %s4671_s2, 128, %s45_s9, [#allocation6]  }
  0x47   :  { %s4445_s22 = scalar_lea.hbm %s4673_s4, 16 }
  0x48   :  { %p4446_p4 = scmp.ne.s32.totalorder %s4673_s4, %s4445_s22  ;;  %p4449_p5 = scmp.lt.u32.totalorder %s4445_s22, %s4673_s4 }
  0x4a   :  { %p4451_p6 = pnand %p4449_p5, %p4446_p4 }
  0x4c   :  { %4454 = shalt.err (!%p4451_p6)
}
  0x4d   :  { %s4455_s27 = scalar_lea.vmem %s67_s11, 16  ;;  %s4459_s28 = scalar_lea.vmem %s67_s11, 32 }
  0x4e   :  { %p4456_p7 = scmp.ne.s32.totalorder %s67_s11, %s4455_s27  ;;  %p4460_p8 = scmp.lt.s32.totalorder %s67_s11, %s67_s11 }
  0x4f   :  { %p4461_p9 = scmp.lt.s32.totalorder %s4459_s28, %s4455_s27 }
  0x51   :  { %p4462_p10 = por %p4461_p9, %p4460_p8 }
  0x53   :  { %p4463_p11 = pnand %p4462_p10, %p4456_p7 }
  0x55   :  { %4466 = shalt.err (!%p4463_p11)
}
  0x56   :  { %69 = dma.hbm_to_vmem [thread:$0]  %s4673_s4, 16, %s67_s11, [#allocation9]  }
  0x57   :  { %4489 = dma.done.wait [#allocation3], 1536  }
  0x58   :  { %4490 = vsyncadd [#allocation3], 4294965760 }
  0x59   :  { %4491 = dma.done.wait [#allocation6], 49280  }
  0x5a   :  { %4492 = vsyncadd [#allocation6], 4294918016 }
  0x5b   :  { %4493 = dma.done.wait [#allocation9], 8208  }
  0x5c   :  { %4494 = vsyncadd [#allocation9], 4294959088  ;;  %v104_v0 = vld [vmem:[#allocation5] sm:$0xff]  ;;  %v105_v2 = vld [vmem:[#allocation5 + $0x8] sm:$0xff]  ;;  %s4508_s4 = smov [#allocation11]  }
  0x5d   :  { %v108_v1 = vld [vmem:[#allocation5 + $0x20] sm:$0xff]  ;;  %v109_v4 = vld [vmem:[#allocation5 + $0x28] sm:$0xff]  ;;  %v93_v54 = vld [vmem:[#allocation2 + $0x38] sm:$0xff]  ;;  %s3680_s3 = sshll.u32 %s4508_s4, 4  ;;  %s3681_s3 = int_to_ptr.vmem [resolvable:$true] %s3680_s3 }
  0x5e   :  { %v3695_v3 = vcombine.high %v104_v0, %v108_v1  ;;  %v3694_v5 = vcombine.low %v104_v0, %v108_v1  ;;  %v112_v6 = vld [vmem:[#allocation5 + $0x40] sm:$0xff]  ;;  %v3697_v8 = vcombine.high %v105_v2, %v109_v4  ;;  %v3696_v9 = vcombine.low %v105_v2, %v109_v4  ;;  %v113_v11 = vld [vmem:[#allocation5 + $0x48] sm:$0xff]  ;;  %s4467_s30 = scalar_lea.vmem %s3681_s3, 256  ;;  %p4472_p13 = scmp.lt.s32.totalorder %s3681_s3, %s3681_s3 }
  0x5f   :  { %v116_v7 = vld [vmem:[#allocation5 + $0x60] sm:$0xff]  ;;  %v117_v12 = vld [vmem:[#allocation5 + $0x68] sm:$0xff]  ;;  %p4468_p12 = scmp.ne.s32.totalorder %s3681_s3, %s4467_s30  ;;  %p4473_p0 = scmp.lt.s32.totalorder %s4467_s30, %s4467_s30 }
  0x60   :  { %v3703_v10 = vcombine.high %v112_v6, %v116_v7  ;;  %v120_v13 = vld [vmem:[#allocation5 + $0x80] sm:$0xff]  ;;  %2450 = vmatprep.subr.bf16.mxu0 %v3695_v3  ;;  %v3705_v14 = vcombine.high %v113_v11, %v117_v12  ;;  %v121_v16 = vld [vmem:[#allocation5 + $0x88] sm:$0xff]  ;;  %2579 = vmatprep.subr.bf16.mxu1 %v3697_v8  ;;  %v3702_v18 = vcombine.low %v112_v6, %v116_v7 }
  0x61   :  { %v124_v15 = vld [vmem:[#allocation5 + $0xa0] sm:$0xff]  ;;  %v125_v17 = vld [vmem:[#allocation5 + $0xa8] sm:$0xff]  ;;  %2451 = vmatpush1.bf16.msra.mxu0 %v3694_v5  ;;  %2580 = vmatpush1.bf16.msra.mxu1 %v3696_v9  ;;  %v3704_v19 = vcombine.low %v113_v11, %v117_v12  ;;  %p4474_p1 = por %p4473_p0, %p4472_p13 }
  0x62   :  { %2452 = vmatprep.subr.bf16.mxu0 %v3703_v10  ;;  %v3711_v20 = vcombine.high %v120_v13, %v124_v15  ;;  %2581 = vmatprep.subr.bf16.mxu1 %v3705_v14  ;;  %v3713_v21 = vcombine.high %v121_v16, %v125_v17  ;;  %v128_v22 = vld [vmem:[#allocation5 + $0xc0] sm:$0xff]  ;;  %v129_v24 = vld [vmem:[#allocation5 + $0xc8] sm:$0xff]  ;;  %v3710_v26 = vcombine.low %v120_v13, %v124_v15 }
  0x63   :  { %v132_v23 = vld [vmem:[#allocation5 + $0xe0] sm:$0xff]  ;;  %v133_v25 = vld [vmem:[#allocation5 + $0xe8] sm:$0xff]  ;;  %v3712_v27 = vcombine.low %v121_v16, %v125_v17  ;;  %p4475_p2 = pnand %p4474_p1, %p4468_p12 }
  0x64   :  { %v3719_v28 = vcombine.high %v128_v22, %v132_v23  ;;  %v3721_v29 = vcombine.high %v129_v24, %v133_v25  ;;  %v136_v30 = vld [vmem:[#allocation5 + $0x100] sm:$0xff]  ;;  %v137_v32 = vld [vmem:[#allocation5 + $0x108] sm:$0xff]  ;;  %v3718_v34 = vcombine.low %v128_v22, %v132_v23  ;;  %v3720_v35 = vcombine.low %v129_v24, %v133_v25 }
  0x65   :  { %2453 = vmatpush1.bf16.msra.mxu0 %v3702_v18  ;;  %2582 = vmatpush1.bf16.msra.mxu1 %v3704_v19  ;;  %v140_v31 = vld [vmem:[#allocation5 + $0x120] sm:$0xff]  ;;  %v141_v33 = vld [vmem:[#allocation5 + $0x128] sm:$0xff] }
  0x66   :  { %2454 = vmatprep.subr.bf16.mxu0 %v3711_v20  ;;  %2583 = vmatprep.subr.bf16.mxu1 %v3713_v21  ;;  %v3727_v36 = vcombine.high %v136_v30, %v140_v31  ;;  %v3729_v37 = vcombine.high %v137_v32, %v141_v33  ;;  %v144_v38 = vld [vmem:[#allocation5 + $0x140] sm:$0xff]  ;;  %v145_v40 = vld [vmem:[#allocation5 + $0x148] sm:$0xff]  ;;  %v3726_v42 = vcombine.low %v136_v30, %v140_v31 }
  0x67   :  { %v148_v39 = vld [vmem:[#allocation5 + $0x160] sm:$0xff]  ;;  %v149_v41 = vld [vmem:[#allocation5 + $0x168] sm:$0xff]  ;;  %v3728_v43 = vcombine.low %v137_v32, %v141_v33 }
  0x68   :  { %v3735_v44 = vcombine.high %v144_v38, %v148_v39  ;;  %v3737_v45 = vcombine.high %v145_v40, %v149_v41  ;;  %v152_v46 = vld [vmem:[#allocation5 + $0x180] sm:$0xff]  ;;  %v153_v48 = vld [vmem:[#allocation5 + $0x188] sm:$0xff]  ;;  %v3734_v50 = vcombine.low %v144_v38, %v148_v39  ;;  %v3736_v51 = vcombine.low %v145_v40, %v149_v41 }
  0x69   :  { %2455 = vmatpush1.bf16.msra.mxu0 %v3710_v26  ;;  %2584 = vmatpush1.bf16.msra.mxu1 %v3712_v27  ;;  %v156_v47 = vld [vmem:[#allocation5 + $0x1a0] sm:$0xff]  ;;  %v157_v49 = vld [vmem:[#allocation5 + $0x1a8] sm:$0xff] }
  0x6a   :  { %2456 = vmatprep.subr.bf16.mxu0 %v3719_v28  ;;  %2585 = vmatprep.subr.bf16.mxu1 %v3721_v29  ;;  %v3743_v52 = vcombine.high %v152_v46, %v156_v47  ;;  %v87_v53 = vld [vmem:[#allocation2 + $0x8] sm:$0xff]  ;;  %v3745_v55 = vcombine.high %v153_v48, %v157_v49  ;;  %v160_v56 = vld [vmem:[#allocation5 + $0x1c0] sm:$0xff]  ;;  %v3742_v61 = vcombine.low %v152_v46, %v156_v47 }
  0x6b   :  { %v164_v57 = vld [vmem:[#allocation5 + $0x1e0] sm:$0xff]  ;;  %v4601_v58 = vpack.c.bf16 %v93_v54, %v87_v53  ;;  %v161_v59 = vld [vmem:[#allocation5 + $0x1c8] sm:$0xff]  ;;  %v3744_v62 = vcombine.low %v153_v48, %v157_v49 }
  0x6c   :  { %v165_v60 = vld [vmem:[#allocation5 + $0x1e8] sm:$0xff]  ;;  %v3751_v63 = vcombine.high %v160_v56, %v164_v57  ;;  %v168_v1 = vld [vmem:[#allocation5 + $0x200] sm:$0xff]  ;;  %v3750_v5 = vcombine.low %v160_v56, %v164_v57 }
  0x6d   :  { %2457 = vmatpush1.bf16.msra.mxu0 %v3718_v34  ;;  %2586 = vmatpush1.bf16.msra.mxu1 %v3720_v35  ;;  %v3753_v0 = vcombine.high %v161_v59, %v165_v60  ;;  %v172_v2 = vld [vmem:[#allocation5 + $0x220] sm:$0xff]  ;;  %v169_v3 = vld [vmem:[#allocation5 + $0x208] sm:$0xff]  ;;  %v3752_v6 = vcombine.low %v161_v59, %v165_v60 }
  0x6e   :  { %2458 = vmatprep.subr.bf16.mxu0 %v3727_v36  ;;  %2587 = vmatprep.subr.bf16.mxu1 %v3729_v37  ;;  %v173_v4 = vld [vmem:[#allocation5 + $0x228] sm:$0xff]  ;;  %v3759_v7 = vcombine.high %v168_v1, %v172_v2  ;;  %v176_v9 = vld [vmem:[#allocation5 + $0x240] sm:$0xff]  ;;  %v3758_v13 = vcombine.low %v168_v1, %v172_v2 }
  0x6f   :  { %2482 = vmatprep.mubr.bf16.mxu0 %v4601_v58  ;;  %2611 = vmatprep.mubr.bf16.mxu1 %v4601_v58  ;;  %v3761_v8 = vcombine.high %v169_v3, %v173_v4  ;;  %v180_v10 = vld [vmem:[#allocation5 + $0x260] sm:$0xff]  ;;  %v177_v11 = vld [vmem:[#allocation5 + $0x248] sm:$0xff]  ;;  %v3760_v14 = vcombine.low %v169_v3, %v173_v4 }
  0x70   :  { %v181_v12 = vld [vmem:[#allocation5 + $0x268] sm:$0xff]  ;;  %v3767_v15 = vcombine.high %v176_v9, %v180_v10  ;;  %v184_v17 = vld [vmem:[#allocation5 + $0x280] sm:$0xff]  ;;  %v3766_v21 = vcombine.low %v176_v9, %v180_v10 }
  0x71   :  { %2459 = vmatpush1.bf16.msra.mxu0 %v3726_v42  ;;  %2588 = vmatpush1.bf16.msra.mxu1 %v3728_v43  ;;  %v3769_v16 = vcombine.high %v177_v11, %v181_v12  ;;  %v188_v18 = vld [vmem:[#allocation5 + $0x2a0] sm:$0xff]  ;;  %v185_v19 = vld [vmem:[#allocation5 + $0x288] sm:$0xff]  ;;  %v3768_v22 = vcombine.low %v177_v11, %v181_v12 }
  0x72   :  { %2460 = vmatprep.subr.bf16.mxu0 %v3735_v44  ;;  %2589 = vmatprep.subr.bf16.mxu1 %v3737_v45  ;;  %v189_v20 = vld [vmem:[#allocation5 + $0x2a8] sm:$0xff]  ;;  %v3775_v23 = vcombine.high %v184_v17, %v188_v18  ;;  %v192_v25 = vld [vmem:[#allocation5 + $0x2c0] sm:$0xff]  ;;  %v3774_v29 = vcombine.low %v184_v17, %v188_v18  ;;  %v89_v17 = vld [vmem:[#allocation2 + $0x18] sm:$0xff] }
  0x73   :  { %v3777_v24 = vcombine.high %v185_v19, %v189_v20  ;;  %v196_v26 = vld [vmem:[#allocation5 + $0x2e0] sm:$0xff]  ;;  %v193_v27 = vld [vmem:[#allocation5 + $0x2c8] sm:$0xff]  ;;  %v3776_v30 = vcombine.low %v185_v19, %v189_v20 }
  0x74   :  { %v197_v28 = vld [vmem:[#allocation5 + $0x2e8] sm:$0xff]  ;;  %v3783_v31 = vcombine.high %v192_v25, %v196_v26  ;;  %v200_v33 = vld [vmem:[#allocation5 + $0x300] sm:$0xff]  ;;  %v3782_v37 = vcombine.low %v192_v25, %v196_v26 }
  0x75   :  { %2461 = vmatpush1.bf16.msra.mxu0 %v3734_v50  ;;  %2590 = vmatpush1.bf16.msra.mxu1 %v3736_v51  ;;  %v3785_v32 = vcombine.high %v193_v27, %v197_v28  ;;  %v204_v34 = vld [vmem:[#allocation5 + $0x320] sm:$0xff]  ;;  %v201_v35 = vld [vmem:[#allocation5 + $0x308] sm:$0xff]  ;;  %v3784_v38 = vcombine.low %v193_v27, %v197_v28 }
  0x76   :  { %2462 = vmatprep.subr.bf16.mxu0 %v3743_v52  ;;  %2591 = vmatprep.subr.bf16.mxu1 %v3745_v55  ;;  %v205_v36 = vld [vmem:[#allocation5 + $0x328] sm:$0xff]  ;;  %v3791_v39 = vcombine.high %v200_v33, %v204_v34  ;;  %v208_v41 = vld [vmem:[#allocation5 + $0x340] sm:$0xff]  ;;  %v3790_v45 = vcombine.low %v200_v33, %v204_v34 }
  0x77   :  { %v3793_v40 = vcombine.high %v201_v35, %v205_v36  ;;  %v212_v42 = vld [vmem:[#allocation5 + $0x360] sm:$0xff]  ;;  %v209_v43 = vld [vmem:[#allocation5 + $0x348] sm:$0xff]  ;;  %v3792_v46 = vcombine.low %v201_v35, %v205_v36 }
  0x78   :  { %v213_v44 = vld [vmem:[#allocation5 + $0x368] sm:$0xff]  ;;  %v3799_v47 = vcombine.high %v208_v41, %v212_v42  ;;  %v216_v49 = vld [vmem:[#allocation5 + $0x380] sm:$0xff]  ;;  %v3798_v53 = vcombine.low %v208_v41, %v212_v42 }
  0x79   :  { %2463 = vmatpush1.bf16.msra.mxu0 %v3742_v61  ;;  %2592 = vmatpush1.bf16.msra.mxu1 %v3744_v62  ;;  %v3801_v48 = vcombine.high %v209_v43, %v213_v44  ;;  %v220_v50 = vld [vmem:[#allocation5 + $0x3a0] sm:$0xff]  ;;  %v217_v51 = vld [vmem:[#allocation5 + $0x388] sm:$0xff]  ;;  %v3800_v54 = vcombine.low %v209_v43, %v213_v44 }
  0x7a   :  { %2464 = vmatprep.subr.bf16.mxu0 %v3751_v63  ;;  %2593 = vmatprep.subr.bf16.mxu1 %v3753_v0  ;;  %v221_v52 = vld [vmem:[#allocation5 + $0x3a8] sm:$0xff]  ;;  %v3807_v55 = vcombine.high %v216_v49, %v220_v50  ;;  %v224_v57 = vld [vmem:[#allocation5 + $0x3c0] sm:$0xff]  ;;  %v3806_v62 = vcombine.low %v216_v49, %v220_v50 }
  0x7b   :  { %v3809_v56 = vcombine.high %v217_v51, %v221_v52  ;;  %v228_v59 = vld [vmem:[#allocation5 + $0x3e0] sm:$0xff]  ;;  %v225_v60 = vld [vmem:[#allocation5 + $0x3c8] sm:$0xff]  ;;  %v3808_v63 = vcombine.low %v217_v51, %v221_v52 }
  0x7c   :  { %v229_v61 = vld [vmem:[#allocation5 + $0x3e8] sm:$0xff]  ;;  %v3815_v0 = vcombine.high %v224_v57, %v228_v59  ;;  %v232_v2 = vld [vmem:[#allocation5 + $0x400] sm:$0xff] }
  0x7d   :  { %2465 = vmatpush1.bf16.msra.mxu0 %v3750_v5  ;;  %2594 = vmatpush1.bf16.msra.mxu1 %v3752_v6  ;;  %v3817_v1 = vcombine.high %v225_v60, %v229_v61  ;;  %v236_v3 = vld [vmem:[#allocation5 + $0x420] sm:$0xff]  ;;  %v233_v4 = vld [vmem:[#allocation5 + $0x408] sm:$0xff]  ;;  %v3814_v6 = vcombine.low %v224_v57, %v228_v59  ;;  %v3816_v9 = vcombine.low %v225_v60, %v229_v61 }
  0x7e   :  { %2466 = vmatprep.subr.bf16.mxu0 %v3759_v7  ;;  %2595 = vmatprep.subr.bf16.mxu1 %v3761_v8  ;;  %v237_v5 = vld [vmem:[#allocation5 + $0x428] sm:$0xff]  ;;  %v86_v7 = vld [vmem:[#allocation2] sm:$0xff]  ;;  %v92_v8 = vld [vmem:[#allocation2 + $0x30] sm:$0xff]  ;;  %v3823_v10 = vcombine.high %v232_v2, %v236_v3  ;;  %v3822_v19 = vcombine.low %v232_v2, %v236_v3 }
  0x7f   :  { %v3825_v11 = vcombine.high %v233_v4, %v237_v5  ;;  %v240_v12 = vld [vmem:[#allocation5 + $0x440] sm:$0xff]  ;;  %v95_v18 = vld [vmem:[#allocation2 + $0x48] sm:$0xff]  ;;  %v3824_v20 = vcombine.low %v233_v4, %v237_v5 }
  0x80   :  { %v4607_v25 = vpack.c.bf16 %v95_v18, %v89_v17  ;;  %v249_v26 = vld [vmem:[#allocation5 + $0x488] sm:$0xff]  ;;  %v304_v17 = vld [vmem:[#allocation5 + $0x640] sm:$0xff] }
  0x81   :  { %2467 = vmatpush1.bf16.msra.mxu0 %v3758_v13  ;;  %2596 = vmatpush1.bf16.msra.mxu1 %v3760_v14  ;;  %v244_v13 = vld [vmem:[#allocation5 + $0x460] sm:$0xff]  ;;  %v241_v14 = vld [vmem:[#allocation5 + $0x448] sm:$0xff] }
  0x82   :  { %2468 = vmatprep.subr.bf16.mxu0 %v3767_v15  ;;  %2597 = vmatprep.subr.bf16.mxu1 %v3769_v16  ;;  %v4605_v15 = vpack.c.bf16 %v92_v8, %v86_v7  ;;  %v245_v16 = vld [vmem:[#allocation5 + $0x468] sm:$0xff]  ;;  %v3830_v28 = vcombine.low %v240_v12, %v244_v13  ;;  %v296_v8 = vld [vmem:[#allocation5 + $0x600] sm:$0xff] }
  0x83   :  { %v253_v27 = vld [vmem:[#allocation5 + $0x4a8] sm:$0xff]  ;;  %v308_v18 = vld [vmem:[#allocation5 + $0x660] sm:$0xff] }
  0x84   :  { %v3841_v33 = vcombine.high %v249_v26, %v253_v27  ;;  %v257_v34 = vld [vmem:[#allocation5 + $0x4c8] sm:$0xff] }
  0x85   :  { %2469 = vmatpush1.bf16.msra.mxu0 %v3766_v21  ;;  %2598 = vmatpush1.bf16.msra.mxu1 %v3768_v22  ;;  %v3831_v21 = vcombine.high %v240_v12, %v244_v13  ;;  %v3833_v22 = vcombine.high %v241_v14, %v245_v16  ;;  %v261_v35 = vld [vmem:[#allocation5 + $0x4e8] sm:$0xff] }
  0x86   :  { %2470 = vmatprep.subr.bf16.mxu0 %v3775_v23  ;;  %2599 = vmatprep.subr.bf16.mxu1 %v3777_v24  ;;  %v248_v23 = vld [vmem:[#allocation5 + $0x480] sm:$0xff]  ;;  %v265_v41 = vld [vmem:[#allocation5 + $0x508] sm:$0xff]  ;;  %v3849_v42 = vcombine.high %v257_v34, %v261_v35 }
  0x87   :  { %v252_v24 = vld [vmem:[#allocation5 + $0x4a0] sm:$0xff]  ;;  %v269_v43 = vld [vmem:[#allocation5 + $0x528] sm:$0xff] }
  0x88   :  { %v3838_v36 = vcombine.low %v248_v23, %v252_v24  ;;  %v273_v49 = vld [vmem:[#allocation5 + $0x548] sm:$0xff]  ;;  %v3857_v50 = vcombine.high %v265_v41, %v269_v43 }
  0x89   :  { %2471 = vmatpush1.bf16.msra.mxu0 %v3774_v29  ;;  %2600 = vmatpush1.bf16.msra.mxu1 %v3776_v30  ;;  %v3832_v29 = vcombine.low %v241_v14, %v245_v16  ;;  %v3839_v30 = vcombine.high %v248_v23, %v252_v24  ;;  %v277_v51 = vld [vmem:[#allocation5 + $0x568] sm:$0xff]  ;;  %v3895_v24 = vcombine.high %v304_v17, %v308_v18 }
  0x8a   :  { %2472 = vmatprep.subr.bf16.mxu0 %v3783_v31  ;;  %2601 = vmatprep.subr.bf16.mxu1 %v3785_v32  ;;  %v256_v31 = vld [vmem:[#allocation5 + $0x4c0] sm:$0xff]  ;;  %v281_v57 = vld [vmem:[#allocation5 + $0x588] sm:$0xff]  ;;  %v3865_v59 = vcombine.high %v273_v49, %v277_v51 }
  0x8b   :  { %v260_v32 = vld [vmem:[#allocation5 + $0x4e0] sm:$0xff]  ;;  %v285_v60 = vld [vmem:[#allocation5 + $0x5a8] sm:$0xff] }
  0x8c   :  { %v3846_v44 = vcombine.low %v256_v31, %v260_v32  ;;  %v289_v2 = vld [vmem:[#allocation5 + $0x5c8] sm:$0xff]  ;;  %v3873_v3 = vcombine.high %v281_v57, %v285_v60 }
  0x8d   :  { %2473 = vmatpush1.bf16.msra.mxu0 %v3782_v37  ;;  %2602 = vmatpush1.bf16.msra.mxu1 %v3784_v38  ;;  %v3840_v37 = vcombine.low %v249_v26, %v253_v27  ;;  %v3847_v38 = vcombine.high %v256_v31, %v260_v32  ;;  %v293_v4 = vld [vmem:[#allocation5 + $0x5e8] sm:$0xff]  ;;  %v312_v26 = vld [vmem:[#allocation5 + $0x680] sm:$0xff]  ;;  %v3894_v31 = vcombine.low %v304_v17, %v308_v18  ;;  %v88_v17 = vld [vmem:[#allocation2 + $0x10] sm:$0xff] }
  0x8e   :  { %2474 = vmatprep.subr.bf16.mxu0 %v3791_v39  ;;  %2603 = vmatprep.subr.bf16.mxu1 %v3793_v40  ;;  %v264_v39 = vld [vmem:[#allocation5 + $0x500] sm:$0xff]  ;;  %v301_v12 = vld [vmem:[#allocation5 + $0x628] sm:$0xff]  ;;  %v3880_v14 = vcombine.low %v289_v2, %v293_v4 }
  0x8f   :  { %v268_v40 = vld [vmem:[#allocation5 + $0x520] sm:$0xff] }
  0x90   :  { %v3854_v52 = vcombine.low %v264_v39, %v268_v40  ;;  %v316_v27 = vld [vmem:[#allocation5 + $0x6a0] sm:$0xff] }
  0x91   :  { %2475 = vmatpush1.bf16.msra.mxu0 %v3790_v45  ;;  %2604 = vmatpush1.bf16.msra.mxu1 %v3792_v46  ;;  %v3848_v45 = vcombine.low %v257_v34, %v261_v35  ;;  %v3855_v46 = vcombine.high %v264_v39, %v268_v40  ;;  %v320_v34 = vld [vmem:[#allocation5 + $0x6c0] sm:$0xff]  ;;  %v3902_v39 = vcombine.low %v312_v26, %v316_v27 }
  0x92   :  { %2476 = vmatprep.subr.bf16.mxu0 %v3799_v47  ;;  %2605 = vmatprep.subr.bf16.mxu1 %v3801_v48  ;;  %v272_v47 = vld [vmem:[#allocation5 + $0x540] sm:$0xff] }
  0x93   :  { %v276_v48 = vld [vmem:[#allocation5 + $0x560] sm:$0xff] }
  0x94   :  { %v3862_v61 = vcombine.low %v272_v47, %v276_v48  ;;  %v324_v35 = vld [vmem:[#allocation5 + $0x6e0] sm:$0xff] }
  0x95   :  { %2477 = vmatpush1.bf16.msra.mxu0 %v3798_v53  ;;  %2606 = vmatpush1.bf16.msra.mxu1 %v3800_v54  ;;  %v3856_v53 = vcombine.low %v265_v41, %v269_v43  ;;  %v3863_v54 = vcombine.high %v272_v47, %v276_v48  ;;  %v3911_v41 = vcombine.high %v320_v34, %v324_v35  ;;  %v332_v43 = vld [vmem:[#allocation5 + $0x720] sm:$0xff] }
  0x96   :  { %2478 = vmatprep.subr.bf16.mxu0 %v3807_v55  ;;  %2607 = vmatprep.subr.bf16.mxu1 %v3809_v56  ;;  %v280_v55 = vld [vmem:[#allocation5 + $0x580] sm:$0xff]  ;;  %v3910_v47 = vcombine.low %v320_v34, %v324_v35 }
  0x97   :  { %v284_v56 = vld [vmem:[#allocation5 + $0x5a0] sm:$0xff] }
  0x98   :  { %v3870_v5 = vcombine.low %v280_v55, %v284_v56  ;;  %v94_v18 = vld [vmem:[#allocation2 + $0x40] sm:$0xff] }
  0x99   :  { %2479 = vmatpush1.bf16.msra.mxu0 %v3806_v62  ;;  %2608 = vmatpush1.bf16.msra.mxu1 %v3808_v63  ;;  %v3864_v62 = vcombine.low %v273_v49, %v277_v51  ;;  %v3871_v63 = vcombine.high %v280_v55, %v284_v56  ;;  %v340_v51 = vld [vmem:[#allocation5 + $0x760] sm:$0xff] }
  0x9a   :  { %2480 = vmatprep.subr.bf16.mxu0 %v3815_v0  ;;  %2609 = vmatprep.subr.bf16.mxu1 %v3817_v1  ;;  %v288_v0 = vld [vmem:[#allocation5 + $0x5c0] sm:$0xff] }
  0x9b   :  { %v292_v1 = vld [vmem:[#allocation5 + $0x5e0] sm:$0xff] }
  0x9c   :  { %v3879_v7 = vcombine.high %v288_v0, %v292_v1  ;;  %v3878_v13 = vcombine.low %v288_v0, %v292_v1  ;;  %v376_v34 = vld [vmem:[#allocation5 + $0x880] sm:$0xff] }
  0x9d   :  { %2481 = vmatpush1.bf16.msra.mxu0 %v3814_v6  ;;  %2610 = vmatpush1.bf16.msra.mxu1 %v3816_v9  ;;  %v3872_v6 = vcombine.low %v281_v57, %v285_v60  ;;  %v300_v9 = vld [vmem:[#allocation5 + $0x620] sm:$0xff] }
  0x9e   :  { %2493 = vmatprep.subr.bf16.mxu0 %v3823_v10  ;;  %2622 = vmatprep.subr.bf16.mxu1 %v3825_v11  ;;  %v297_v10 = vld [vmem:[#allocation5 + $0x608] sm:$0xff]  ;;  %v3881_v11 = vcombine.high %v289_v2, %v293_v4  ;;  %v3887_v16 = vcombine.high %v296_v8, %v300_v9  ;;  %v348_v60 = vld [vmem:[#allocation5 + $0x7a0] sm:$0xff] }
  0x9f   :  { %v3888_v23 = vcombine.low %v297_v10, %v301_v12  ;;  %v356_v4 = vld [vmem:[#allocation5 + $0x7e0] sm:$0xff] }
  0xa0   :  { %2483 = vmatmul.mubr.bf16.vlgmr.msra.gmra.mrb[0].mxu0 %v4605_v15  ;;  %2612 = vmatmul.mubr.bf16.vlgmr.msra.gmra.mrb[0].mxu1 %v4605_v15  ;;  %v380_v35 = vld [vmem:[#allocation5 + $0x8a0] sm:$0xff] }
  0xa1   :  { %2494 = vmatpush1.bf16.msra.mxu0 %v3822_v19  ;;  %2623 = vmatpush1.bf16.msra.mxu1 %v3824_v20  ;;  %v305_v19 = vld [vmem:[#allocation5 + $0x648] sm:$0xff]  ;;  %v3889_v20 = vcombine.high %v297_v10, %v301_v12  ;;  %v364_v12 = vld [vmem:[#allocation5 + $0x820] sm:$0xff] }
  0xa2   :  { %2495 = vmatprep.subr.bf16.mxu0 %v3831_v21  ;;  %2624 = vmatprep.subr.bf16.mxu1 %v3833_v22  ;;  %v309_v21 = vld [vmem:[#allocation5 + $0x668] sm:$0xff]  ;;  %v3886_v22 = vcombine.low %v296_v8, %v300_v9  ;;  %v360_v9 = vld [vmem:[#allocation5 + $0x800] sm:$0xff] }
  0xa3   :  { %2525 = vmatprep.mubr.bf16.mxu0 %v4607_v25  ;;  %2654 = vmatprep.mubr.bf16.mxu1 %v4607_v25  ;;  %v3896_v32 = vcombine.low %v305_v19, %v309_v21 }
  0xa5   :  { %2496 = vmatpush1.bf16.msra.mxu0 %v3830_v28  ;;  %2625 = vmatpush1.bf16.msra.mxu1 %v3832_v29  ;;  %v313_v28 = vld [vmem:[#allocation5 + $0x688] sm:$0xff]  ;;  %v3897_v29 = vcombine.high %v305_v19, %v309_v21  ;;  %v372_v21 = vld [vmem:[#allocation5 + $0x860] sm:$0xff] }
  0xa6   :  { %2497 = vmatprep.subr.bf16.mxu0 %v3839_v30  ;;  %2626 = vmatprep.subr.bf16.mxu1 %v3841_v33  ;;  %v317_v30 = vld [vmem:[#allocation5 + $0x6a8] sm:$0xff]  ;;  %v3903_v33 = vcombine.high %v312_v26, %v316_v27 }
  0xa7   :  { %v3904_v40 = vcombine.low %v313_v28, %v317_v30  ;;  %v373_v26 = vld [vmem:[#allocation5 + $0x868] sm:$0xff] }
  0xa8   :  { %v91_v27 = vld [vmem:[#allocation2 + $0x28] sm:$0xff] }
  0xa9   :  { %2498 = vmatpush1.bf16.msra.mxu0 %v3838_v36  ;;  %2627 = vmatpush1.bf16.msra.mxu1 %v3840_v37  ;;  %v321_v36 = vld [vmem:[#allocation5 + $0x6c8] sm:$0xff]  ;;  %v3905_v37 = vcombine.high %v313_v28, %v317_v30  ;;  %v4613_v30 = vpack.c.bf16 %v94_v18, %v88_v17 }
  0xaa   :  { %2499 = vmatprep.subr.bf16.mxu0 %v3847_v38  ;;  %2628 = vmatprep.subr.bf16.mxu1 %v3849_v42  ;;  %v325_v38 = vld [vmem:[#allocation5 + $0x6e8] sm:$0xff]  ;;  %v328_v42 = vld [vmem:[#allocation5 + $0x700] sm:$0xff] }
  0xab   :  { %v3912_v48 = vcombine.low %v321_v36, %v325_v38  ;;  %v3919_v49 = vcombine.high %v328_v42, %v332_v43  ;;  %v3918_v55 = vcombine.low %v328_v42, %v332_v43  ;;  %v3967_v42 = vcombine.high %v376_v34, %v380_v35  ;;  %v421_v17 = vld [vmem:[#allocation5 + $0x9e8] sm:$0xff] }
  0xad   :  { %2500 = vmatpush1.bf16.msra.mxu0 %v3846_v44  ;;  %2629 = vmatpush1.bf16.msra.mxu1 %v3848_v45  ;;  %v329_v44 = vld [vmem:[#allocation5 + $0x708] sm:$0xff]  ;;  %v3913_v45 = vcombine.high %v321_v36, %v325_v38 }
  0xae   :  { %2501 = vmatprep.subr.bf16.mxu0 %v3855_v46  ;;  %2630 = vmatprep.subr.bf16.mxu1 %v3857_v50  ;;  %v333_v46 = vld [vmem:[#allocation5 + $0x728] sm:$0xff]  ;;  %v336_v50 = vld [vmem:[#allocation5 + $0x740] sm:$0xff] }
  0xaf   :  { %v3920_v56 = vcombine.low %v329_v44, %v333_v46  ;;  %v3927_v57 = vcombine.high %v336_v50, %v340_v51  ;;  %v3926_v0 = vcombine.low %v336_v50, %v340_v51  ;;  %v377_v36 = vld [vmem:[#allocation5 + $0x888] sm:$0xff] }
  0xb0   :  { %v381_v38 = vld [vmem:[#allocation5 + $0x8a8] sm:$0xff] }
  0xb1   :  { %2502 = vmatpush1.bf16.msra.mxu0 %v3854_v52  ;;  %2631 = vmatpush1.bf16.msra.mxu1 %v3856_v53  ;;  %v337_v52 = vld [vmem:[#allocation5 + $0x748] sm:$0xff]  ;;  %v3921_v53 = vcombine.high %v329_v44, %v333_v46  ;;  %v3969_v43 = vcombine.high %v377_v36, %v381_v38  ;;  %v384_v44 = vld [vmem:[#allocation5 + $0x8c0] sm:$0xff] }
  0xb2   :  { %2503 = vmatprep.subr.bf16.mxu0 %v3863_v54  ;;  %2632 = vmatprep.subr.bf16.mxu1 %v3865_v59  ;;  %v341_v54 = vld [vmem:[#allocation5 + $0x768] sm:$0xff]  ;;  %v344_v59 = vld [vmem:[#allocation5 + $0x780] sm:$0xff] }
  0xb3   :  { %v3928_v1 = vcombine.low %v337_v52, %v341_v54  ;;  %v3935_v2 = vcombine.high %v344_v59, %v348_v60  ;;  %v3934_v8 = vcombine.low %v344_v59, %v348_v60  ;;  %v385_v46 = vld [vmem:[#allocation5 + $0x8c8] sm:$0xff] }
  0xb5   :  { %2504 = vmatpush1.bf16.msra.mxu0 %v3862_v61  ;;  %2633 = vmatpush1.bf16.msra.mxu1 %v3864_v62  ;;  %v345_v61 = vld [vmem:[#allocation5 + $0x788] sm:$0xff]  ;;  %v3929_v62 = vcombine.high %v337_v52, %v341_v54  ;;  %v392_v52 = vld [vmem:[#allocation5 + $0x900] sm:$0xff] }
  0xb6   :  { %2505 = vmatprep.subr.bf16.mxu0 %v3871_v63  ;;  %2634 = vmatprep.subr.bf16.mxu1 %v3873_v3  ;;  %v349_v63 = vld [vmem:[#allocation5 + $0x7a8] sm:$0xff]  ;;  %v352_v3 = vld [vmem:[#allocation5 + $0x7c0] sm:$0xff] }
  0xb7   :  { %v3936_v10 = vcombine.low %v345_v61, %v349_v63  ;;  %v3942_v19 = vcombine.low %v352_v3, %v356_v4  ;;  %v393_v54 = vld [vmem:[#allocation5 + $0x908] sm:$0xff] }
  0xb9   :  { %2506 = vmatpush1.bf16.msra.mxu0 %v3870_v5  ;;  %2635 = vmatpush1.bf16.msra.mxu1 %v3872_v6  ;;  %v353_v5 = vld [vmem:[#allocation5 + $0x7c8] sm:$0xff]  ;;  %v3937_v6 = vcombine.high %v345_v61, %v349_v63  ;;  %v400_v61 = vld [vmem:[#allocation5 + $0x940] sm:$0xff] }
  0xba   :  { %2507 = vmatprep.subr.bf16.mxu0 %v3879_v7  ;;  %2636 = vmatprep.subr.bf16.mxu1 %v3881_v11  ;;  %v357_v7 = vld [vmem:[#allocation5 + $0x7e8] sm:$0xff]  ;;  %v3943_v11 = vcombine.high %v352_v3, %v356_v4 }
  0xbb   :  { %v401_v63 = vld [vmem:[#allocation5 + $0x948] sm:$0xff] }
  0xbd   :  { %2508 = vmatpush1.bf16.msra.mxu0 %v3878_v13  ;;  %2637 = vmatpush1.bf16.msra.mxu1 %v3880_v14  ;;  %v361_v13 = vld [vmem:[#allocation5 + $0x808] sm:$0xff] }
  0xbe   :  { %2509 = vmatprep.subr.bf16.mxu0 %v3887_v16  ;;  %2638 = vmatprep.subr.bf16.mxu1 %v3889_v20  ;;  %v365_v14 = vld [vmem:[#allocation5 + $0x828] sm:$0xff]  ;;  %v3945_v16 = vcombine.high %v353_v5, %v357_v7  ;;  %v368_v20 = vld [vmem:[#allocation5 + $0x840] sm:$0xff] }
  0xbf   :  { %v3953_v28 = vcombine.high %v361_v13, %v365_v14 }
  0xc1   :  { %2510 = vmatpush1.bf16.msra.mxu0 %v3886_v22  ;;  %2639 = vmatpush1.bf16.msra.mxu1 %v3888_v23  ;;  %v3944_v22 = vcombine.low %v353_v5, %v357_v7  ;;  %v3951_v23 = vcombine.high %v360_v9, %v364_v12  ;;  %v408_v5 = vld [vmem:[#allocation5 + $0x980] sm:$0xff]  ;;  %v409_v7 = vld [vmem:[#allocation5 + $0x988] sm:$0xff] }
  0xc2   :  { %2511 = vmatprep.subr.bf16.mxu0 %v3895_v24  ;;  %2640 = vmatprep.subr.bf16.mxu1 %v3897_v29  ;;  %v369_v24 = vld [vmem:[#allocation5 + $0x848] sm:$0xff]  ;;  %v97_v29 = vld [vmem:[#allocation2 + $0x58] sm:$0xff] }
  0xc5   :  { %2512 = vmatpush1.bf16.msra.mxu0 %v3894_v31  ;;  %2641 = vmatpush1.bf16.msra.mxu1 %v3896_v32  ;;  %v3950_v31 = vcombine.low %v360_v9, %v364_v12  ;;  %v3952_v32 = vcombine.low %v361_v13, %v365_v14  ;;  %v416_v13 = vld [vmem:[#allocation5 + $0x9c0] sm:$0xff] }
  0xc6   :  { %2513 = vmatprep.subr.bf16.mxu0 %v3903_v33  ;;  %2642 = vmatprep.subr.bf16.mxu1 %v3905_v37  ;;  %v3959_v33 = vcombine.high %v368_v20, %v372_v21  ;;  %v3961_v37 = vcombine.high %v369_v24, %v373_v26  ;;  %v420_v14 = vld [vmem:[#allocation5 + $0x9e0] sm:$0xff] }
  0xc9   :  { %2514 = vmatpush1.bf16.msra.mxu0 %v3902_v39  ;;  %2643 = vmatpush1.bf16.msra.mxu1 %v3904_v40  ;;  %v4615_v39 = vpack.c.bf16 %v97_v29, %v91_v27  ;;  %v3958_v40 = vcombine.low %v368_v20, %v372_v21  ;;  %v4007_v20 = vcombine.high %v416_v13, %v420_v14 }
  0xca   :  { %2515 = vmatprep.subr.bf16.mxu0 %v3911_v41  ;;  %2644 = vmatprep.subr.bf16.mxu1 %v3913_v45  ;;  %v3960_v41 = vcombine.low %v369_v24, %v373_v26  ;;  %v388_v45 = vld [vmem:[#allocation5 + $0x8e0] sm:$0xff]  ;;  %v425_v24 = vld [vmem:[#allocation5 + $0xa08] sm:$0xff]  ;;  %v4006_v27 = vcombine.low %v416_v13, %v420_v14 }
  0xcb   :  { %v3975_v50 = vcombine.high %v384_v44, %v388_v45  ;;  %v429_v26 = vld [vmem:[#allocation5 + $0xa28] sm:$0xff] }
  0xcc   :  { %v477_v13 = vld [vmem:[#allocation5 + $0xba8] sm:$0xff] }
  0xcd   :  { %2516 = vmatpush1.bf16.msra.mxu0 %v3910_v47  ;;  %2645 = vmatpush1.bf16.msra.mxu1 %v3912_v48  ;;  %v389_v47 = vld [vmem:[#allocation5 + $0x8e8] sm:$0xff]  ;;  %v3966_v48 = vcombine.low %v376_v34, %v380_v35 }
  0xce   :  { %2517 = vmatprep.subr.bf16.mxu0 %v3919_v49  ;;  %2646 = vmatprep.subr.bf16.mxu1 %v3921_v53  ;;  %v3968_v49 = vcombine.low %v377_v36, %v381_v38  ;;  %v3977_v51 = vcombine.high %v385_v46, %v389_v47  ;;  %v396_v53 = vld [vmem:[#allocation5 + $0x920] sm:$0xff]  ;;  %v433_v34 = vld [vmem:[#allocation5 + $0xa48] sm:$0xff] }
  0xcf   :  { %v3983_v59 = vcombine.high %v392_v52, %v396_v53  ;;  %v437_v35 = vld [vmem:[#allocation5 + $0xa68] sm:$0xff] }
  0xd1   :  { %2518 = vmatpush1.bf16.msra.mxu0 %v3918_v55  ;;  %2647 = vmatpush1.bf16.msra.mxu1 %v3920_v56  ;;  %v397_v55 = vld [vmem:[#allocation5 + $0x928] sm:$0xff]  ;;  %v3974_v56 = vcombine.low %v384_v44, %v388_v45 }
  0xd2   :  { %2519 = vmatprep.subr.bf16.mxu0 %v3927_v57  ;;  %2648 = vmatprep.subr.bf16.mxu1 %v3929_v62  ;;  %v3976_v57 = vcombine.low %v385_v46, %v389_v47  ;;  %v3985_v60 = vcombine.high %v393_v54, %v397_v55  ;;  %v404_v62 = vld [vmem:[#allocation5 + $0x960] sm:$0xff]  ;;  %v445_v44 = vld [vmem:[#allocation5 + $0xaa8] sm:$0xff]  ;;  %v4024_v46 = vcombine.low %v433_v34, %v437_v35 }
  0xd3   :  { %v3991_v3 = vcombine.high %v400_v61, %v404_v62  ;;  %v3990_v9 = vcombine.low %v400_v61, %v404_v62  ;;  %v461_v61 = vld [vmem:[#allocation5 + $0xb28] sm:$0xff] }
  0xd5   :  { %2520 = vmatpush1.bf16.msra.mxu0 %v3926_v0  ;;  %2649 = vmatpush1.bf16.msra.mxu1 %v3928_v1  ;;  %v405_v0 = vld [vmem:[#allocation5 + $0x968] sm:$0xff]  ;;  %v3982_v1 = vcombine.low %v392_v52, %v396_v53 }
  0xd6   :  { %2521 = vmatprep.subr.bf16.mxu0 %v3935_v2  ;;  %2650 = vmatprep.subr.bf16.mxu1 %v3937_v6  ;;  %v3984_v2 = vcombine.low %v393_v54, %v397_v55  ;;  %v3993_v4 = vcombine.high %v401_v63, %v405_v0  ;;  %v412_v6 = vld [vmem:[#allocation5 + $0x9a0] sm:$0xff]  ;;  %v453_v52 = vld [vmem:[#allocation5 + $0xae8] sm:$0xff] }
  0xd7   :  { %v3998_v18 = vcombine.low %v408_v5, %v412_v6 }
  0xd9   :  { %2522 = vmatpush1.bf16.msra.mxu0 %v3934_v8  ;;  %2651 = vmatpush1.bf16.msra.mxu1 %v3936_v10  ;;  %v413_v8 = vld [vmem:[#allocation5 + $0x9a8] sm:$0xff]  ;;  %v3992_v10 = vcombine.low %v401_v63, %v405_v0 }
  0xda   :  { %2523 = vmatprep.subr.bf16.mxu0 %v3943_v11  ;;  %2652 = vmatprep.subr.bf16.mxu1 %v3945_v16  ;;  %v3999_v11 = vcombine.high %v408_v5, %v412_v6  ;;  %v4001_v12 = vcombine.high %v409_v7, %v413_v8  ;;  %v417_v16 = vld [vmem:[#allocation5 + $0x9c8] sm:$0xff] }
  0xdb   :  { %v4009_v21 = vcombine.high %v417_v16, %v421_v17  ;;  %v469_v5 = vld [vmem:[#allocation5 + $0xb68] sm:$0xff] }
  0xdd   :  { %2524 = vmatpush1.bf16.msra.mxu0 %v3942_v19  ;;  %2653 = vmatpush1.bf16.msra.mxu1 %v3944_v22  ;;  %v4000_v19 = vcombine.low %v409_v7, %v413_v8  ;;  %v424_v22 = vld [vmem:[#allocation5 + $0xa00] sm:$0xff] }
  0xde   :  { %2536 = vmatprep.subr.bf16.mxu0 %v3951_v23  ;;  %2665 = vmatprep.subr.bf16.mxu1 %v3953_v28  ;;  %v428_v23 = vld [vmem:[#allocation5 + $0xa20] sm:$0xff]  ;;  %v4008_v28 = vcombine.low %v417_v16, %v421_v17 }
  0xdf   :  { %v4015_v29 = vcombine.high %v424_v22, %v428_v23  ;;  %v4014_v36 = vcombine.low %v424_v22, %v428_v23  ;;  %v485_v22 = vld [vmem:[#allocation5 + $0xbe8] sm:$0xff] }
  0xe0   :  { %2526 = vmatmul.mubr.bf16.vlgmr.msra.gmra.mrb[0].mxu0 %v4613_v30  ;;  %2655 = vmatmul.mubr.bf16.vlgmr.msra.gmra.mrb[0].mxu1 %v4613_v30 }
  0xe1   :  { %2537 = vmatpush1.bf16.msra.mxu0 %v3950_v31  ;;  %2666 = vmatpush1.bf16.msra.mxu1 %v3952_v32  ;;  %v4017_v31 = vcombine.high %v425_v24, %v429_v26  ;;  %v432_v32 = vld [vmem:[#allocation5 + $0xa40] sm:$0xff] }
  0xe2   :  { %2538 = vmatprep.subr.bf16.mxu0 %v3959_v33  ;;  %2667 = vmatprep.subr.bf16.mxu1 %v3961_v37  ;;  %v436_v33 = vld [vmem:[#allocation5 + $0xa60] sm:$0xff]  ;;  %v4016_v37 = vcombine.low %v425_v24, %v429_v26 }
  0xe3   :  { %2568 = vmatprep.mubr.bf16.mxu0 %v4615_v39  ;;  %2697 = vmatprep.mubr.bf16.mxu1 %v4615_v39  ;;  %v4023_v38 = vcombine.high %v432_v32, %v436_v33  ;;  %v4022_v45 = vcombine.low %v432_v32, %v436_v33  ;;  %v111_v32 = vld [vmem:[#allocation5 + $0x38] sm:$0xff] }
  0xe5   :  { %2539 = vmatpush1.bf16.msra.mxu0 %v3958_v40  ;;  %2668 = vmatpush1.bf16.msra.mxu1 %v3960_v41  ;;  %v4025_v40 = vcombine.high %v433_v34, %v437_v35  ;;  %v440_v41 = vld [vmem:[#allocation5 + $0xa80] sm:$0xff]  ;;  %v96_v35 = vld [vmem:[#allocation2 + $0x50] sm:$0xff] }
  0xe6   :  { %2540 = vmatprep.subr.bf16.mxu0 %v3967_v42  ;;  %2669 = vmatprep.subr.bf16.mxu1 %v3969_v43  ;;  %v444_v42 = vld [vmem:[#allocation5 + $0xaa0] sm:$0xff]  ;;  %v441_v43 = vld [vmem:[#allocation5 + $0xa88] sm:$0xff] }
  0xe7   :  { %v4031_v47 = vcombine.high %v440_v41, %v444_v42  ;;  %v4030_v53 = vcombine.low %v440_v41, %v444_v42  ;;  %v4032_v54 = vcombine.low %v441_v43, %v445_v44  ;;  %v90_v34 = vld [vmem:[#allocation2 + $0x20] sm:$0xff]  ;;  %v118_v41 = vld [vmem:[#allocation5 + $0x70] sm:$0xff] }
  0xe8   :  { %v4621_v42 = vpack.c.bf16 %v96_v35, %v90_v34 }
  0xe9   :  { %2541 = vmatpush1.bf16.msra.mxu0 %v3966_v48  ;;  %2670 = vmatpush1.bf16.msra.mxu1 %v3968_v49  ;;  %v4033_v48 = vcombine.high %v441_v43, %v445_v44  ;;  %v448_v49 = vld [vmem:[#allocation5 + $0xac0] sm:$0xff]  ;;  %v115_v43 = vld [vmem:[#allocation5 + $0x58] sm:$0xff] }
  0xea   :  { %2542 = vmatprep.subr.bf16.mxu0 %v3975_v50  ;;  %2671 = vmatprep.subr.bf16.mxu1 %v3977_v51  ;;  %v452_v50 = vld [vmem:[#allocation5 + $0xae0] sm:$0xff]  ;;  %v449_v51 = vld [vmem:[#allocation5 + $0xac8] sm:$0xff]  ;;  %v119_v44 = vld [vmem:[#allocation5 + $0x78] sm:$0xff] }
  0xeb   :  { %v4039_v55 = vcombine.high %v448_v49, %v452_v50  ;;  %v4038_v62 = vcombine.low %v448_v49, %v452_v50  ;;  %v4040_v63 = vcombine.low %v449_v51, %v453_v52  ;;  %v122_v49 = vld [vmem:[#allocation5 + $0x90] sm:$0xff] }
  0xec   :  { %v126_v50 = vld [vmem:[#allocation5 + $0xb0] sm:$0xff] }
  0xed   :  { %2543 = vmatpush1.bf16.msra.mxu0 %v3974_v56  ;;  %2672 = vmatpush1.bf16.msra.mxu1 %v3976_v57  ;;  %v4041_v56 = vcombine.high %v449_v51, %v453_v52  ;;  %v456_v57 = vld [vmem:[#allocation5 + $0xb00] sm:$0xff]  ;;  %v123_v51 = vld [vmem:[#allocation5 + $0x98] sm:$0xff] }
  0xee   :  { %2544 = vmatprep.subr.bf16.mxu0 %v3983_v59  ;;  %2673 = vmatprep.subr.bf16.mxu1 %v3985_v60  ;;  %v460_v59 = vld [vmem:[#allocation5 + $0xb20] sm:$0xff]  ;;  %v457_v60 = vld [vmem:[#allocation5 + $0xb08] sm:$0xff]  ;;  %v127_v52 = vld [vmem:[#allocation5 + $0xb8] sm:$0xff] }
  0xef   :  { %v4047_v0 = vcombine.high %v456_v57, %v460_v59  ;;  %v4046_v6 = vcombine.low %v456_v57, %v460_v59  ;;  %v4048_v7 = vcombine.low %v457_v60, %v461_v61  ;;  %v130_v57 = vld [vmem:[#allocation5 + $0xd0] sm:$0xff] }
  0xf0   :  { %v134_v59 = vld [vmem:[#allocation5 + $0xf0] sm:$0xff] }
  0xf1   :  { %2545 = vmatpush1.bf16.msra.mxu0 %v3982_v1  ;;  %2674 = vmatpush1.bf16.msra.mxu1 %v3984_v2  ;;  %v4049_v1 = vcombine.high %v457_v60, %v461_v61  ;;  %v464_v2 = vld [vmem:[#allocation5 + $0xb40] sm:$0xff]  ;;  %v131_v60 = vld [vmem:[#allocation5 + $0xd8] sm:$0xff] }
  0xf2   :  { %2546 = vmatprep.subr.bf16.mxu0 %v3991_v3  ;;  %2675 = vmatprep.subr.bf16.mxu1 %v3993_v4  ;;  %v468_v3 = vld [vmem:[#allocation5 + $0xb60] sm:$0xff]  ;;  %v465_v4 = vld [vmem:[#allocation5 + $0xb48] sm:$0xff]  ;;  %v135_v61 = vld [vmem:[#allocation5 + $0xf8] sm:$0xff] }
  0xf3   :  { %v4055_v8 = vcombine.high %v464_v2, %v468_v3  ;;  %v4054_v14 = vcombine.low %v464_v2, %v468_v3  ;;  %v4056_v16 = vcombine.low %v465_v4, %v469_v5  ;;  %v138_v2 = vld [vmem:[#allocation5 + $0x110] sm:$0xff] }
  0xf4   :  { %v142_v3 = vld [vmem:[#allocation5 + $0x130] sm:$0xff] }
  0xf5   :  { %2547 = vmatpush1.bf16.msra.mxu0 %v3990_v9  ;;  %2676 = vmatpush1.bf16.msra.mxu1 %v3992_v10  ;;  %v4057_v9 = vcombine.high %v465_v4, %v469_v5  ;;  %v472_v10 = vld [vmem:[#allocation5 + $0xb80] sm:$0xff]  ;;  %v139_v4 = vld [vmem:[#allocation5 + $0x118] sm:$0xff] }
  0xf6   :  { %2548 = vmatprep.subr.bf16.mxu0 %v3999_v11  ;;  %2677 = vmatprep.subr.bf16.mxu1 %v4001_v12  ;;  %v476_v11 = vld [vmem:[#allocation5 + $0xba0] sm:$0xff]  ;;  %v473_v12 = vld [vmem:[#allocation5 + $0xb88] sm:$0xff]  ;;  %v143_v5 = vld [vmem:[#allocation5 + $0x138] sm:$0xff] }
  0xf7   :  { %v4063_v17 = vcombine.high %v472_v10, %v476_v11  ;;  %v4062_v23 = vcombine.low %v472_v10, %v476_v11  ;;  %v4064_v24 = vcombine.low %v473_v12, %v477_v13  ;;  %v150_v10 = vld [vmem:[#allocation5 + $0x170] sm:$0xff]  ;;  %v147_v11 = vld [vmem:[#allocation5 + $0x158] sm:$0xff] }
  0xf9   :  { %2549 = vmatpush1.bf16.msra.mxu0 %v3998_v18  ;;  %2678 = vmatpush1.bf16.msra.mxu1 %v4000_v19  ;;  %v4065_v18 = vcombine.high %v473_v12, %v477_v13  ;;  %v480_v19 = vld [vmem:[#allocation5 + $0xbc0] sm:$0xff]  ;;  %v151_v12 = vld [vmem:[#allocation5 + $0x178] sm:$0xff]  ;;  %v3730_v13 = vcombine.low %v138_v2, %v142_v3 }
  0xfa   :  { %2550 = vmatprep.subr.bf16.mxu0 %v4007_v20  ;;  %2679 = vmatprep.subr.bf16.mxu1 %v4009_v21  ;;  %v484_v20 = vld [vmem:[#allocation5 + $0xbe0] sm:$0xff]  ;;  %v481_v21 = vld [vmem:[#allocation5 + $0xbc8] sm:$0xff] }
  0xfb   :  { %v4071_v26 = vcombine.high %v480_v19, %v484_v20  ;;  %v4070_v33 = vcombine.low %v480_v19, %v484_v20  ;;  %v158_v19 = vld [vmem:[#allocation5 + $0x1b0] sm:$0xff]  ;;  %v155_v20 = vld [vmem:[#allocation5 + $0x198] sm:$0xff] }
  0xfd   :  { %2551 = vmatpush1.bf16.msra.mxu0 %v4006_v27  ;;  %2680 = vmatpush1.bf16.msra.mxu1 %v4008_v28  ;;  %v4073_v27 = vcombine.high %v481_v21, %v485_v22  ;;  %v106_v28 = vld [vmem:[#allocation5 + $0x10] sm:$0xff] }
  0xfe   :  { %2552 = vmatprep.subr.bf16.mxu0 %v4015_v29  ;;  %2681 = vmatprep.subr.bf16.mxu1 %v4017_v31  ;;  %v110_v29 = vld [vmem:[#allocation5 + $0x30] sm:$0xff]  ;;  %v107_v31 = vld [vmem:[#allocation5 + $0x18] sm:$0xff] }
 0x101   :  { %2553 = vmatpush1.bf16.msra.mxu0 %v4014_v36  ;;  %2682 = vmatpush1.bf16.msra.mxu1 %v4016_v37  ;;  %v4072_v36 = vcombine.low %v481_v21, %v485_v22  ;;  %v3699_v37 = vcombine.high %v106_v28, %v110_v29  ;;  %v159_v21 = vld [vmem:[#allocation5 + $0x1b8] sm:$0xff] }
 0x102   :  { %2554 = vmatprep.subr.bf16.mxu0 %v4023_v38  ;;  %2683 = vmatprep.subr.bf16.mxu1 %v4025_v40  ;;  %v3701_v38 = vcombine.high %v107_v31, %v111_v32  ;;  %v114_v40 = vld [vmem:[#allocation5 + $0x50] sm:$0xff] }
 0x105   :  { %2555 = vmatpush1.bf16.msra.mxu0 %v4022_v45  ;;  %2684 = vmatpush1.bf16.msra.mxu1 %v4024_v46  ;;  %v3698_v45 = vcombine.low %v106_v28, %v110_v29  ;;  %v3700_v46 = vcombine.low %v107_v31, %v111_v32  ;;  %v166_v28 = vld [vmem:[#allocation5 + $0x1f0] sm:$0xff]  ;;  %v163_v29 = vld [vmem:[#allocation5 + $0x1d8] sm:$0xff] }
 0x106   :  { %2556 = vmatprep.subr.bf16.mxu0 %v4031_v47  ;;  %2685 = vmatprep.subr.bf16.mxu1 %v4033_v48  ;;  %v3707_v47 = vcombine.high %v114_v40, %v118_v41  ;;  %v3709_v48 = vcombine.high %v115_v43, %v119_v44  ;;  %v167_v31 = vld [vmem:[#allocation5 + $0x1f8] sm:$0xff] }
 0x107   :  { %v3757_v35 = vcombine.high %v163_v29, %v167_v31 }
 0x109   :  { %2557 = vmatpush1.bf16.msra.mxu0 %v4030_v53  ;;  %2686 = vmatpush1.bf16.msra.mxu1 %v4032_v54  ;;  %v3706_v53 = vcombine.low %v114_v40, %v118_v41  ;;  %v3708_v54 = vcombine.low %v115_v43, %v119_v44  ;;  %v175_v40 = vld [vmem:[#allocation5 + $0x238] sm:$0xff]  ;;  %v3756_v43 = vcombine.low %v163_v29, %v167_v31 }
 0x10a   :  { %2558 = vmatprep.subr.bf16.mxu0 %v4039_v55  ;;  %2687 = vmatprep.subr.bf16.mxu1 %v4041_v56  ;;  %v3715_v55 = vcombine.high %v122_v49, %v126_v50  ;;  %v3717_v56 = vcombine.high %v123_v51, %v127_v52 }
 0x10d   :  { %2559 = vmatpush1.bf16.msra.mxu0 %v4038_v62  ;;  %2688 = vmatpush1.bf16.msra.mxu1 %v4040_v63  ;;  %v3714_v62 = vcombine.low %v122_v49, %v126_v50  ;;  %v3716_v63 = vcombine.low %v123_v51, %v127_v52  ;;  %v183_v49 = vld [vmem:[#allocation5 + $0x278] sm:$0xff] }
 0x10e   :  { %2560 = vmatprep.subr.bf16.mxu0 %v4047_v0  ;;  %2689 = vmatprep.subr.bf16.mxu1 %v4049_v1  ;;  %v3723_v0 = vcombine.high %v130_v57, %v134_v59  ;;  %v3725_v1 = vcombine.high %v131_v60, %v135_v61 }
 0x111   :  { %2561 = vmatpush1.bf16.msra.mxu0 %v4046_v6  ;;  %2690 = vmatpush1.bf16.msra.mxu1 %v4048_v7  ;;  %v3722_v6 = vcombine.low %v130_v57, %v134_v59  ;;  %v3724_v7 = vcombine.low %v131_v60, %v135_v61  ;;  %v191_v57 = vld [vmem:[#allocation5 + $0x2b8] sm:$0xff] }
 0x112   :  { %2562 = vmatprep.subr.bf16.mxu0 %v4055_v8  ;;  %2691 = vmatprep.subr.bf16.mxu1 %v4057_v9  ;;  %v3731_v8 = vcombine.high %v138_v2, %v142_v3  ;;  %v146_v9 = vld [vmem:[#allocation5 + $0x150] sm:$0xff]  ;;  %v199_v2 = vld [vmem:[#allocation5 + $0x2f8] sm:$0xff] }
 0x113   :  { %v3738_v22 = vcombine.low %v146_v9, %v150_v10 }
 0x115   :  { %2563 = vmatpush1.bf16.msra.mxu0 %v4054_v14  ;;  %2692 = vmatpush1.bf16.msra.mxu1 %v4056_v16  ;;  %v3732_v14 = vcombine.low %v139_v4, %v143_v5  ;;  %v3739_v16 = vcombine.high %v146_v9, %v150_v10  ;;  %v207_v9 = vld [vmem:[#allocation5 + $0x338] sm:$0xff] }
 0x116   :  { %2564 = vmatprep.subr.bf16.mxu0 %v4063_v17  ;;  %2693 = vmatprep.subr.bf16.mxu1 %v4065_v18  ;;  %v3741_v17 = vcombine.high %v147_v11, %v151_v12  ;;  %v154_v18 = vld [vmem:[#allocation5 + $0x190] sm:$0xff] }
 0x117   :  { %v3746_v32 = vcombine.low %v154_v18, %v158_v19 }
 0x119   :  { %2565 = vmatpush1.bf16.msra.mxu0 %v4062_v23  ;;  %2694 = vmatpush1.bf16.msra.mxu1 %v4064_v24  ;;  %v3740_v23 = vcombine.low %v147_v11, %v151_v12  ;;  %v3747_v24 = vcombine.high %v154_v18, %v158_v19  ;;  %v215_v18 = vld [vmem:[#allocation5 + $0x378] sm:$0xff] }
 0x11a   :  { %2566 = vmatprep.subr.bf16.mxu0 %v4071_v26  ;;  %2695 = vmatprep.subr.bf16.mxu1 %v4073_v27  ;;  %v3749_v26 = vcombine.high %v155_v20, %v159_v21  ;;  %v162_v27 = vld [vmem:[#allocation5 + $0x1d0] sm:$0xff] }
 0x11b   :  { %v3755_v34 = vcombine.high %v162_v27, %v166_v28  ;;  %v3754_v41 = vcombine.low %v162_v27, %v166_v28  ;;  %v223_v27 = vld [vmem:[#allocation5 + $0x3b8] sm:$0xff] }
 0x11d   :  { %2567 = vmatpush1.bf16.msra.mxu0 %v4070_v33  ;;  %2696 = vmatpush1.bf16.msra.mxu1 %v4072_v36  ;;  %v3748_v33 = vcombine.low %v155_v20, %v159_v21  ;;  %v170_v36 = vld [vmem:[#allocation5 + $0x210] sm:$0xff] }
 0x11e   :  { %2708 = vmatprep.subr.bf16.mxu0 %v3699_v37  ;;  %2837 = vmatprep.subr.bf16.mxu1 %v3701_v38  ;;  %v174_v37 = vld [vmem:[#allocation5 + $0x230] sm:$0xff]  ;;  %v171_v38 = vld [vmem:[#allocation5 + $0x218] sm:$0xff] }
 0x11f   :  { %v3763_v44 = vcombine.high %v170_v36, %v174_v37  ;;  %v3762_v50 = vcombine.low %v170_v36, %v174_v37  ;;  %v3764_v51 = vcombine.low %v171_v38, %v175_v40  ;;  %v231_v36 = vld [vmem:[#allocation5 + $0x3f8] sm:$0xff] }
 0x120   :  { %2569 = vmatmul.mubr.bf16.vlgmr.msra.gmra.mrb[0].mxu0 %v4621_v42  ;;  %2698 = vmatmul.mubr.bf16.vlgmr.msra.gmra.mrb[0].mxu1 %v4621_v42 }
 0x121   :  { %2709 = vmatpush1.bf16.msra.mxu0 %v3698_v45  ;;  %2838 = vmatpush1.bf16.msra.mxu1 %v3700_v46  ;;  %v3765_v45 = vcombine.high %v171_v38, %v175_v40  ;;  %v178_v46 = vld [vmem:[#allocation5 + $0x250] sm:$0xff] }
 0x122   :  { %2710 = vmatprep.subr.bf16.mxu0 %v3707_v47  ;;  %2839 = vmatprep.subr.bf16.mxu1 %v3709_v48  ;;  %v182_v47 = vld [vmem:[#allocation5 + $0x270] sm:$0xff]  ;;  %v179_v48 = vld [vmem:[#allocation5 + $0x258] sm:$0xff] }
 0x123   :  { %2740 = vmatprep.mubr.bf16.mxu0 %v4601_v58  ;;  %2869 = vmatprep.mubr.bf16.mxu1 %v4601_v58  ;;  %v3733_v58 = vcombine.high %v139_v4, %v143_v5  ;;  %v3771_v52 = vcombine.high %v178_v46, %v182_v47  ;;  %v3770_v59 = vcombine.low %v178_v46, %v182_v47  ;;  %v239_v46 = vld [vmem:[#allocation5 + $0x438] sm:$0xff] }
 0x124   :  { %v3772_v60 = vcombine.low %v179_v48, %v183_v49 }
 0x125   :  { %2711 = vmatpush1.bf16.msra.mxu0 %v3706_v53  ;;  %2840 = vmatpush1.bf16.msra.mxu1 %v3708_v54  ;;  %v3773_v53 = vcombine.high %v179_v48, %v183_v49  ;;  %v186_v54 = vld [vmem:[#allocation5 + $0x290] sm:$0xff] }
 0x126   :  { %2712 = vmatprep.subr.bf16.mxu0 %v3715_v55  ;;  %2841 = vmatprep.subr.bf16.mxu1 %v3717_v56  ;;  %v190_v55 = vld [vmem:[#allocation5 + $0x2b0] sm:$0xff]  ;;  %v187_v56 = vld [vmem:[#allocation5 + $0x298] sm:$0xff] }
 0x127   :  { %v3779_v61 = vcombine.high %v186_v54, %v190_v55  ;;  %v3778_v3 = vcombine.low %v186_v54, %v190_v55  ;;  %v3780_v4 = vcombine.low %v187_v56, %v191_v57  ;;  %v247_v54 = vld [vmem:[#allocation5 + $0x478] sm:$0xff] }
 0x129   :  { %2713 = vmatpush1.bf16.msra.mxu0 %v3714_v62  ;;  %2842 = vmatpush1.bf16.msra.mxu1 %v3716_v63  ;;  %v3781_v62 = vcombine.high %v187_v56, %v191_v57  ;;  %v194_v63 = vld [vmem:[#allocation5 + $0x2d0] sm:$0xff] }
 0x12a   :  { %2714 = vmatprep.subr.bf16.mxu0 %v3723_v0  ;;  %2843 = vmatprep.subr.bf16.mxu1 %v3725_v1  ;;  %v198_v0 = vld [vmem:[#allocation5 + $0x2f0] sm:$0xff]  ;;  %v195_v1 = vld [vmem:[#allocation5 + $0x2d8] sm:$0xff] }
 0x12b   :  { %v3787_v5 = vcombine.high %v194_v63, %v198_v0  ;;  %v3786_v10 = vcombine.low %v194_v63, %v198_v0  ;;  %v3788_v11 = vcombine.low %v195_v1, %v199_v2  ;;  %v255_v63 = vld [vmem:[#allocation5 + $0x4b8] sm:$0xff] }
 0x12d   :  { %2715 = vmatpush1.bf16.msra.mxu0 %v3722_v6  ;;  %2844 = vmatpush1.bf16.msra.mxu1 %v3724_v7  ;;  %v3789_v6 = vcombine.high %v195_v1, %v199_v2  ;;  %v202_v7 = vld [vmem:[#allocation5 + $0x310] sm:$0xff] }
 0x12e   :  { %2716 = vmatprep.subr.bf16.mxu0 %v3731_v8  ;;  %2845 = vmatprep.subr.bf16.mxu1 %v3733_v58  ;;  %v206_v8 = vld [vmem:[#allocation5 + $0x330] sm:$0xff]  ;;  %v203_v58 = vld [vmem:[#allocation5 + $0x318] sm:$0xff] }
 0x12f   :  { %v3795_v12 = vcombine.high %v202_v7, %v206_v8  ;;  %v3794_v19 = vcombine.low %v202_v7, %v206_v8  ;;  %v3796_v20 = vcombine.low %v203_v58, %v207_v9  ;;  %v263_v7 = vld [vmem:[#allocation5 + $0x4f8] sm:$0xff] }
 0x131   :  { %2717 = vmatpush1.bf16.msra.mxu0 %v3730_v13  ;;  %2846 = vmatpush1.bf16.msra.mxu1 %v3732_v14  ;;  %v3797_v13 = vcombine.high %v203_v58, %v207_v9  ;;  %v210_v14 = vld [vmem:[#allocation5 + $0x350] sm:$0xff] }
 0x132   :  { %2718 = vmatprep.subr.bf16.mxu0 %v3739_v16  ;;  %2847 = vmatprep.subr.bf16.mxu1 %v3741_v17  ;;  %v214_v16 = vld [vmem:[#allocation5 + $0x370] sm:$0xff]  ;;  %v211_v17 = vld [vmem:[#allocation5 + $0x358] sm:$0xff] }
 0x133   :  { %v3803_v21 = vcombine.high %v210_v14, %v214_v16  ;;  %v3802_v28 = vcombine.low %v210_v14, %v214_v16  ;;  %v3804_v29 = vcombine.low %v211_v17, %v215_v18 }
 0x135   :  { %2719 = vmatpush1.bf16.msra.mxu0 %v3738_v22  ;;  %2848 = vmatpush1.bf16.msra.mxu1 %v3740_v23  ;;  %v3805_v22 = vcombine.high %v211_v17, %v215_v18  ;;  %v218_v23 = vld [vmem:[#allocation5 + $0x390] sm:$0xff] }
 0x136   :  { %2720 = vmatprep.subr.bf16.mxu0 %v3747_v24  ;;  %2849 = vmatprep.subr.bf16.mxu1 %v3749_v26  ;;  %v222_v24 = vld [vmem:[#allocation5 + $0x3b0] sm:$0xff]  ;;  %v219_v26 = vld [vmem:[#allocation5 + $0x398] sm:$0xff] }
 0x137   :  { %v3811_v31 = vcombine.high %v218_v23, %v222_v24  ;;  %v3810_v37 = vcombine.low %v218_v23, %v222_v24  ;;  %v3812_v38 = vcombine.low %v219_v26, %v223_v27  ;;  %v274_v18 = vld [vmem:[#allocation5 + $0x550] sm:$0xff] }
 0x139   :  { %2721 = vmatpush1.bf16.msra.mxu0 %v3746_v32  ;;  %2850 = vmatpush1.bf16.msra.mxu1 %v3748_v33  ;;  %v3813_v32 = vcombine.high %v219_v26, %v223_v27  ;;  %v226_v33 = vld [vmem:[#allocation5 + $0x3d0] sm:$0xff] }
 0x13a   :  { %2722 = vmatprep.subr.bf16.mxu0 %v3755_v34  ;;  %2851 = vmatprep.subr.bf16.mxu1 %v3757_v35  ;;  %v230_v34 = vld [vmem:[#allocation5 + $0x3f0] sm:$0xff]  ;;  %v227_v35 = vld [vmem:[#allocation5 + $0x3d8] sm:$0xff] }
 0x13b   :  { %v3819_v40 = vcombine.high %v226_v33, %v230_v34  ;;  %v3818_v47 = vcombine.low %v226_v33, %v230_v34  ;;  %v3820_v48 = vcombine.low %v227_v35, %v231_v36  ;;  %v282_v27 = vld [vmem:[#allocation5 + $0x590] sm:$0xff] }
 0x13d   :  { %2723 = vmatpush1.bf16.msra.mxu0 %v3754_v41  ;;  %2852 = vmatpush1.bf16.msra.mxu1 %v3756_v43  ;;  %v3821_v41 = vcombine.high %v227_v35, %v231_v36  ;;  %v234_v43 = vld [vmem:[#allocation5 + $0x410] sm:$0xff] }
 0x13e   :  { %2724 = vmatprep.subr.bf16.mxu0 %v3763_v44  ;;  %2853 = vmatprep.subr.bf16.mxu1 %v3765_v45  ;;  %v238_v44 = vld [vmem:[#allocation5 + $0x430] sm:$0xff]  ;;  %v235_v45 = vld [vmem:[#allocation5 + $0x418] sm:$0xff] }
 0x13f   :  { %v3827_v49 = vcombine.high %v234_v43, %v238_v44  ;;  %v3826_v55 = vcombine.low %v234_v43, %v238_v44  ;;  %v3828_v56 = vcombine.low %v235_v45, %v239_v46  ;;  %v290_v36 = vld [vmem:[#allocation5 + $0x5d0] sm:$0xff] }
 0x141   :  { %2725 = vmatpush1.bf16.msra.mxu0 %v3762_v50  ;;  %2854 = vmatpush1.bf16.msra.mxu1 %v3764_v51  ;;  %v3829_v50 = vcombine.high %v235_v45, %v239_v46  ;;  %v242_v51 = vld [vmem:[#allocation5 + $0x450] sm:$0xff] }
 0x142   :  { %2726 = vmatprep.subr.bf16.mxu0 %v3771_v52  ;;  %2855 = vmatprep.subr.bf16.mxu1 %v3773_v53  ;;  %v246_v52 = vld [vmem:[#allocation5 + $0x470] sm:$0xff]  ;;  %v243_v53 = vld [vmem:[#allocation5 + $0x458] sm:$0xff] }
 0x143   :  { %v3835_v57 = vcombine.high %v242_v51, %v246_v52  ;;  %v3834_v0 = vcombine.low %v242_v51, %v246_v52  ;;  %v3836_v1 = vcombine.low %v243_v53, %v247_v54  ;;  %v298_v46 = vld [vmem:[#allocation5 + $0x610] sm:$0xff] }
 0x145   :  { %2727 = vmatpush1.bf16.msra.mxu0 %v3770_v59  ;;  %2856 = vmatpush1.bf16.msra.mxu1 %v3772_v60  ;;  %v3837_v59 = vcombine.high %v243_v53, %v247_v54  ;;  %v250_v60 = vld [vmem:[#allocation5 + $0x490] sm:$0xff] }
 0x146   :  { %2728 = vmatprep.subr.bf16.mxu0 %v3779_v61  ;;  %2857 = vmatprep.subr.bf16.mxu1 %v3781_v62  ;;  %v254_v61 = vld [vmem:[#allocation5 + $0x4b0] sm:$0xff]  ;;  %v251_v62 = vld [vmem:[#allocation5 + $0x498] sm:$0xff] }
 0x147   :  { %v3843_v2 = vcombine.high %v250_v60, %v254_v61  ;;  %v3842_v8 = vcombine.low %v250_v60, %v254_v61  ;;  %v306_v54 = vld [vmem:[#allocation5 + $0x650] sm:$0xff] }
 0x149   :  { %2729 = vmatpush1.bf16.msra.mxu0 %v3778_v3  ;;  %2858 = vmatpush1.bf16.msra.mxu1 %v3780_v4  ;;  %v3845_v3 = vcombine.high %v251_v62, %v255_v63  ;;  %v258_v4 = vld [vmem:[#allocation5 + $0x4d0] sm:$0xff] }
 0x14a   :  { %2730 = vmatprep.subr.bf16.mxu0 %v3787_v5  ;;  %2859 = vmatprep.subr.bf16.mxu1 %v3789_v6  ;;  %v262_v5 = vld [vmem:[#allocation5 + $0x4f0] sm:$0xff]  ;;  %v259_v6 = vld [vmem:[#allocation5 + $0x4d8] sm:$0xff] }
 0x14b   :  { %v3851_v58 = vcombine.high %v258_v4, %v262_v5  ;;  %v3853_v9 = vcombine.high %v259_v6, %v263_v7  ;;  %v3850_v14 = vcombine.low %v258_v4, %v262_v5  ;;  %v3852_v16 = vcombine.low %v259_v6, %v263_v7  ;;  %v322_v7 = vld [vmem:[#allocation5 + $0x6d0] sm:$0xff] }
 0x14d   :  { %2731 = vmatpush1.bf16.msra.mxu0 %v3786_v10  ;;  %2860 = vmatpush1.bf16.msra.mxu1 %v3788_v11  ;;  %v266_v10 = vld [vmem:[#allocation5 + $0x510] sm:$0xff] }
 0x14e   :  { %2732 = vmatprep.subr.bf16.mxu0 %v3795_v12  ;;  %2861 = vmatprep.subr.bf16.mxu1 %v3797_v13  ;;  %v270_v11 = vld [vmem:[#allocation5 + $0x530] sm:$0xff]  ;;  %v267_v12 = vld [vmem:[#allocation5 + $0x518] sm:$0xff] }
 0x14f   :  { %v271_v13 = vld [vmem:[#allocation5 + $0x538] sm:$0xff]  ;;  %v3859_v17 = vcombine.high %v266_v10, %v270_v11 }
 0x150   :  { %v3860_v23 = vcombine.low %v267_v12, %v271_v13 }
 0x151   :  { %2733 = vmatpush1.bf16.msra.mxu0 %v3794_v19  ;;  %2862 = vmatpush1.bf16.msra.mxu1 %v3796_v20  ;;  %v278_v19 = vld [vmem:[#allocation5 + $0x570] sm:$0xff]  ;;  %v275_v20 = vld [vmem:[#allocation5 + $0x558] sm:$0xff] }
 0x152   :  { %2734 = vmatprep.subr.bf16.mxu0 %v3803_v21  ;;  %2863 = vmatprep.subr.bf16.mxu1 %v3805_v22  ;;  %v279_v21 = vld [vmem:[#allocation5 + $0x578] sm:$0xff]  ;;  %v3858_v22 = vcombine.low %v266_v10, %v270_v11  ;;  %v3867_v24 = vcombine.high %v274_v18, %v278_v19 }
 0x153   :  { %v3869_v26 = vcombine.high %v275_v20, %v279_v21  ;;  %v3868_v33 = vcombine.low %v275_v20, %v279_v21  ;;  %v338_v21 = vld [vmem:[#allocation5 + $0x750] sm:$0xff] }
 0x155   :  { %2735 = vmatpush1.bf16.msra.mxu0 %v3802_v28  ;;  %2864 = vmatpush1.bf16.msra.mxu1 %v3804_v29  ;;  %v286_v28 = vld [vmem:[#allocation5 + $0x5b0] sm:$0xff]  ;;  %v283_v29 = vld [vmem:[#allocation5 + $0x598] sm:$0xff] }
 0x156   :  { %2736 = vmatprep.subr.bf16.mxu0 %v3811_v31  ;;  %2865 = vmatprep.subr.bf16.mxu1 %v3813_v32  ;;  %v287_v31 = vld [vmem:[#allocation5 + $0x5b8] sm:$0xff]  ;;  %v3866_v32 = vcombine.low %v274_v18, %v278_v19  ;;  %v3875_v34 = vcombine.high %v282_v27, %v286_v28 }
 0x157   :  { %v3877_v35 = vcombine.high %v283_v29, %v287_v31  ;;  %v3876_v43 = vcombine.low %v283_v29, %v287_v31  ;;  %v346_v31 = vld [vmem:[#allocation5 + $0x790] sm:$0xff] }
 0x159   :  { %2737 = vmatpush1.bf16.msra.mxu0 %v3810_v37  ;;  %2866 = vmatpush1.bf16.msra.mxu1 %v3812_v38  ;;  %v294_v37 = vld [vmem:[#allocation5 + $0x5f0] sm:$0xff]  ;;  %v291_v38 = vld [vmem:[#allocation5 + $0x5d8] sm:$0xff] }
 0x15a   :  { %2738 = vmatprep.subr.bf16.mxu0 %v3819_v40  ;;  %2867 = vmatprep.subr.bf16.mxu1 %v3821_v41  ;;  %v295_v40 = vld [vmem:[#allocation5 + $0x5f8] sm:$0xff]  ;;  %v3874_v41 = vcombine.low %v282_v27, %v286_v28  ;;  %v3883_v44 = vcombine.high %v290_v36, %v294_v37 }
 0x15b   :  { %v3885_v45 = vcombine.high %v291_v38, %v295_v40  ;;  %v3884_v51 = vcombine.low %v291_v38, %v295_v40  ;;  %v354_v40 = vld [vmem:[#allocation5 + $0x7d0] sm:$0xff] }
 0x15d   :  { %2739 = vmatpush1.bf16.msra.mxu0 %v3818_v47  ;;  %2868 = vmatpush1.bf16.msra.mxu1 %v3820_v48  ;;  %v302_v47 = vld [vmem:[#allocation5 + $0x630] sm:$0xff]  ;;  %v299_v48 = vld [vmem:[#allocation5 + $0x618] sm:$0xff] }
 0x15e   :  { %2751 = vmatprep.subr.bf16.mxu0 %v3827_v49  ;;  %2880 = vmatprep.subr.bf16.mxu1 %v3829_v50  ;;  %v303_v49 = vld [vmem:[#allocation5 + $0x638] sm:$0xff]  ;;  %v3882_v50 = vcombine.low %v290_v36, %v294_v37  ;;  %v3891_v52 = vcombine.high %v298_v46, %v302_v47 }
 0x15f   :  { %v3893_v53 = vcombine.high %v299_v48, %v303_v49  ;;  %v3892_v60 = vcombine.low %v299_v48, %v303_v49  ;;  %v362_v49 = vld [vmem:[#allocation5 + $0x810] sm:$0xff] }
 0x160   :  { %2741 = vmatmul.mubr.bf16.vlgmr.msra.gmra.mrb[4].mxu0 %v4605_v15  ;;  %2870 = vmatmul.mubr.bf16.vlgmr.msra.gmra.mrb[4].mxu1 %v4605_v15  ;;  %v3844_v15 = vcombine.low %v251_v62, %v255_v63  ;;  %v314_v63 = vld [vmem:[#allocation5 + $0x690] sm:$0xff] }
 0x161   :  { %2752 = vmatpush1.bf16.msra.mxu0 %v3826_v55  ;;  %2881 = vmatpush1.bf16.msra.mxu1 %v3828_v56  ;;  %v310_v55 = vld [vmem:[#allocation5 + $0x670] sm:$0xff]  ;;  %v307_v56 = vld [vmem:[#allocation5 + $0x658] sm:$0xff] }
 0x162   :  { %2753 = vmatprep.subr.bf16.mxu0 %v3835_v57  ;;  %2882 = vmatprep.subr.bf16.mxu1 %v3837_v59  ;;  %v311_v57 = vld [vmem:[#allocation5 + $0x678] sm:$0xff]  ;;  %v3890_v59 = vcombine.low %v298_v46, %v302_v47  ;;  %v3899_v61 = vcombine.high %v306_v54, %v310_v55 }
 0x163   :  { %2783 = vmatprep.mubr.bf16.mxu0 %v4607_v25  ;;  %2912 = vmatprep.mubr.bf16.mxu1 %v4607_v25  ;;  %v3861_v25 = vcombine.high %v267_v12, %v271_v13  ;;  %v3901_v62 = vcombine.high %v307_v56, %v311_v57  ;;  %v3900_v4 = vcombine.low %v307_v56, %v311_v57  ;;  %v330_v13 = vld [vmem:[#allocation5 + $0x710] sm:$0xff] }
 0x164   :  { %v370_v57 = vld [vmem:[#allocation5 + $0x850] sm:$0xff] }
 0x165   :  { %2754 = vmatpush1.bf16.msra.mxu0 %v3834_v0  ;;  %2883 = vmatpush1.bf16.msra.mxu1 %v3836_v1  ;;  %v318_v0 = vld [vmem:[#allocation5 + $0x6b0] sm:$0xff]  ;;  %v315_v1 = vld [vmem:[#allocation5 + $0x698] sm:$0xff] }
 0x166   :  { %2755 = vmatprep.subr.bf16.mxu0 %v3843_v2  ;;  %2884 = vmatprep.subr.bf16.mxu1 %v3845_v3  ;;  %v319_v2 = vld [vmem:[#allocation5 + $0x6b8] sm:$0xff]  ;;  %v3898_v3 = vcombine.low %v306_v54, %v310_v55  ;;  %v3907_v5 = vcombine.high %v314_v63, %v318_v0 }
 0x167   :  { %v3909_v6 = vcombine.high %v315_v1, %v319_v2  ;;  %v3908_v10 = vcombine.low %v315_v1, %v319_v2  ;;  %v378_v2 = vld [vmem:[#allocation5 + $0x890] sm:$0xff] }
 0x169   :  { %2756 = vmatpush1.bf16.msra.mxu0 %v3842_v8  ;;  %2885 = vmatpush1.bf16.msra.mxu1 %v3844_v15  ;;  %v326_v8 = vld [vmem:[#allocation5 + $0x6f0] sm:$0xff]  ;;  %v323_v15 = vld [vmem:[#allocation5 + $0x6d8] sm:$0xff] }
 0x16a   :  { %2757 = vmatprep.subr.bf16.mxu0 %v3851_v58  ;;  %2886 = vmatprep.subr.bf16.mxu1 %v3853_v9  ;;  %v327_v58 = vld [vmem:[#allocation5 + $0x6f8] sm:$0xff]  ;;  %v3906_v9 = vcombine.low %v314_v63, %v318_v0  ;;  %v3915_v11 = vcombine.high %v322_v7, %v326_v8 }
 0x16b   :  { %v3917_v12 = vcombine.high %v323_v15, %v327_v58  ;;  %v3916_v18 = vcombine.low %v323_v15, %v327_v58  ;;  %v386_v58 = vld [vmem:[#allocation5 + $0x8d0] sm:$0xff] }
 0x16d   :  { %2758 = vmatpush1.bf16.msra.mxu0 %v3850_v14  ;;  %2887 = vmatpush1.bf16.msra.mxu1 %v3852_v16  ;;  %v334_v14 = vld [vmem:[#allocation5 + $0x730] sm:$0xff]  ;;  %v331_v16 = vld [vmem:[#allocation5 + $0x718] sm:$0xff] }
 0x16e   :  { %2759 = vmatprep.subr.bf16.mxu0 %v3859_v17  ;;  %2888 = vmatprep.subr.bf16.mxu1 %v3861_v25  ;;  %v335_v17 = vld [vmem:[#allocation5 + $0x738] sm:$0xff]  ;;  %v3914_v25 = vcombine.low %v322_v7, %v326_v8  ;;  %v3923_v19 = vcombine.high %v330_v13, %v334_v14 }
 0x16f   :  { %v3925_v20 = vcombine.high %v331_v16, %v335_v17  ;;  %v3924_v27 = vcombine.low %v331_v16, %v335_v17  ;;  %v394_v16 = vld [vmem:[#allocation5 + $0x910] sm:$0xff] }
 0x170   :  { %v398_v17 = vld [vmem:[#allocation5 + $0x930] sm:$0xff] }
 0x171   :  { %2760 = vmatpush1.bf16.msra.mxu0 %v3858_v22  ;;  %2889 = vmatpush1.bf16.msra.mxu1 %v3860_v23  ;;  %v342_v22 = vld [vmem:[#allocation5 + $0x770] sm:$0xff]  ;;  %v339_v23 = vld [vmem:[#allocation5 + $0x758] sm:$0xff] }
 0x172   :  { %2761 = vmatprep.subr.bf16.mxu0 %v3867_v24  ;;  %2890 = vmatprep.subr.bf16.mxu1 %v3869_v26  ;;  %v343_v24 = vld [vmem:[#allocation5 + $0x778] sm:$0xff]  ;;  %v3922_v26 = vcombine.low %v330_v13, %v334_v14  ;;  %v3931_v28 = vcombine.high %v338_v21, %v342_v22 }
 0x173   :  { %v3933_v29 = vcombine.high %v339_v23, %v343_v24  ;;  %v3932_v36 = vcombine.low %v339_v23, %v343_v24  ;;  %v406_v23 = vld [vmem:[#allocation5 + $0x970] sm:$0xff]  ;;  %v403_v24 = vld [vmem:[#allocation5 + $0x958] sm:$0xff] }
 0x175   :  { %2762 = vmatpush1.bf16.msra.mxu0 %v3866_v32  ;;  %2891 = vmatpush1.bf16.msra.mxu1 %v3868_v33  ;;  %v350_v32 = vld [vmem:[#allocation5 + $0x7b0] sm:$0xff]  ;;  %v347_v33 = vld [vmem:[#allocation5 + $0x798] sm:$0xff] }
 0x176   :  { %2763 = vmatprep.subr.bf16.mxu0 %v3875_v34  ;;  %2892 = vmatprep.subr.bf16.mxu1 %v3877_v35  ;;  %v351_v34 = vld [vmem:[#allocation5 + $0x7b8] sm:$0xff]  ;;  %v3930_v35 = vcombine.low %v338_v21, %v342_v22  ;;  %v3939_v37 = vcombine.high %v346_v31, %v350_v32  ;;  %v3987_v21 = vcombine.high %v394_v16, %v398_v17  ;;  %v402_v22 = vld [vmem:[#allocation5 + $0x950] sm:$0xff] }
 0x177   :  { %v3941_v38 = vcombine.high %v347_v33, %v351_v34  ;;  %v3940_v46 = vcombine.low %v347_v33, %v351_v34  ;;  %v414_v33 = vld [vmem:[#allocation5 + $0x9b0] sm:$0xff]  ;;  %v411_v34 = vld [vmem:[#allocation5 + $0x998] sm:$0xff] }
 0x179   :  { %2764 = vmatpush1.bf16.msra.mxu0 %v3874_v41  ;;  %2893 = vmatpush1.bf16.msra.mxu1 %v3876_v43  ;;  %v358_v41 = vld [vmem:[#allocation5 + $0x7f0] sm:$0xff]  ;;  %v355_v43 = vld [vmem:[#allocation5 + $0x7d8] sm:$0xff] }
 0x17a   :  { %2765 = vmatprep.subr.bf16.mxu0 %v3883_v44  ;;  %2894 = vmatprep.subr.bf16.mxu1 %v3885_v45  ;;  %v359_v44 = vld [vmem:[#allocation5 + $0x7f8] sm:$0xff]  ;;  %v3938_v45 = vcombine.low %v346_v31, %v350_v32  ;;  %v3947_v47 = vcombine.high %v354_v40, %v358_v41  ;;  %v410_v32 = vld [vmem:[#allocation5 + $0x990] sm:$0xff] }
 0x17b   :  { %v3949_v48 = vcombine.high %v355_v43, %v359_v44  ;;  %v3948_v54 = vcombine.low %v355_v43, %v359_v44  ;;  %v422_v43 = vld [vmem:[#allocation5 + $0x9f0] sm:$0xff]  ;;  %v419_v44 = vld [vmem:[#allocation5 + $0x9d8] sm:$0xff] }
 0x17d   :  { %2766 = vmatpush1.bf16.msra.mxu0 %v3882_v50  ;;  %2895 = vmatpush1.bf16.msra.mxu1 %v3884_v51  ;;  %v366_v50 = vld [vmem:[#allocation5 + $0x830] sm:$0xff]  ;;  %v363_v51 = vld [vmem:[#allocation5 + $0x818] sm:$0xff] }
 0x17e   :  { %2767 = vmatprep.subr.bf16.mxu0 %v3891_v52  ;;  %2896 = vmatprep.subr.bf16.mxu1 %v3893_v53  ;;  %v367_v52 = vld [vmem:[#allocation5 + $0x838] sm:$0xff]  ;;  %v3946_v53 = vcombine.low %v354_v40, %v358_v41  ;;  %v3955_v55 = vcombine.high %v362_v49, %v366_v50  ;;  %v418_v41 = vld [vmem:[#allocation5 + $0x9d0] sm:$0xff] }
 0x17f   :  { %v3957_v56 = vcombine.high %v363_v51, %v367_v52  ;;  %v3956_v63 = vcombine.low %v363_v51, %v367_v52  ;;  %v430_v51 = vld [vmem:[#allocation5 + $0xa30] sm:$0xff]  ;;  %v427_v52 = vld [vmem:[#allocation5 + $0xa18] sm:$0xff] }
 0x181   :  { %2768 = vmatpush1.bf16.msra.mxu0 %v3890_v59  ;;  %2897 = vmatpush1.bf16.msra.mxu1 %v3892_v60  ;;  %v374_v59 = vld [vmem:[#allocation5 + $0x870] sm:$0xff]  ;;  %v371_v60 = vld [vmem:[#allocation5 + $0x858] sm:$0xff] }
 0x182   :  { %2769 = vmatprep.subr.bf16.mxu0 %v3899_v61  ;;  %2898 = vmatprep.subr.bf16.mxu1 %v3901_v62  ;;  %v375_v61 = vld [vmem:[#allocation5 + $0x878] sm:$0xff]  ;;  %v3954_v62 = vcombine.low %v362_v49, %v366_v50  ;;  %v3963_v0 = vcombine.high %v370_v57, %v374_v59  ;;  %v426_v50 = vld [vmem:[#allocation5 + $0xa10] sm:$0xff] }
 0x183   :  { %v3965_v1 = vcombine.high %v371_v60, %v375_v61  ;;  %v3964_v7 = vcombine.low %v371_v60, %v375_v61  ;;  %v438_v60 = vld [vmem:[#allocation5 + $0xa70] sm:$0xff]  ;;  %v435_v61 = vld [vmem:[#allocation5 + $0xa58] sm:$0xff] }
 0x185   :  { %2770 = vmatpush1.bf16.msra.mxu0 %v3898_v3  ;;  %2899 = vmatpush1.bf16.msra.mxu1 %v3900_v4  ;;  %v382_v3 = vld [vmem:[#allocation5 + $0x8b0] sm:$0xff]  ;;  %v379_v4 = vld [vmem:[#allocation5 + $0x898] sm:$0xff] }
 0x186   :  { %2771 = vmatprep.subr.bf16.mxu0 %v3907_v5  ;;  %2900 = vmatprep.subr.bf16.mxu1 %v3909_v6  ;;  %v383_v5 = vld [vmem:[#allocation5 + $0x8b8] sm:$0xff]  ;;  %v3962_v6 = vcombine.low %v370_v57, %v374_v59  ;;  %v3971_v8 = vcombine.high %v378_v2, %v382_v3  ;;  %v434_v59 = vld [vmem:[#allocation5 + $0xa50] sm:$0xff] }
 0x187   :  { %v3973_v15 = vcombine.high %v379_v4, %v383_v5 }
 0x189   :  { %2772 = vmatpush1.bf16.msra.mxu0 %v3906_v9  ;;  %2901 = vmatpush1.bf16.msra.mxu1 %v3908_v10  ;;  %v390_v9 = vld [vmem:[#allocation5 + $0x8f0] sm:$0xff]  ;;  %v387_v10 = vld [vmem:[#allocation5 + $0x8d8] sm:$0xff] }
 0x18a   :  { %2773 = vmatprep.subr.bf16.mxu0 %v3915_v11  ;;  %2902 = vmatprep.subr.bf16.mxu1 %v3917_v12  ;;  %v391_v11 = vld [vmem:[#allocation5 + $0x8f8] sm:$0xff]  ;;  %v3970_v12 = vcombine.low %v378_v2, %v382_v3  ;;  %v3979_v13 = vcombine.high %v386_v58, %v390_v9  ;;  %v442_v3 = vld [vmem:[#allocation5 + $0xa90] sm:$0xff] }
 0x18b   :  { %v3981_v14 = vcombine.high %v387_v10, %v391_v11 }
 0x18d   :  { %2774 = vmatpush1.bf16.msra.mxu0 %v3914_v25  ;;  %2903 = vmatpush1.bf16.msra.mxu1 %v3916_v18  ;;  %v395_v25 = vld [vmem:[#allocation5 + $0x918] sm:$0xff] }
 0x18e   :  { %2775 = vmatprep.subr.bf16.mxu0 %v3923_v19  ;;  %2904 = vmatprep.subr.bf16.mxu1 %v3925_v20  ;;  %v399_v18 = vld [vmem:[#allocation5 + $0x938] sm:$0xff]  ;;  %v3978_v19 = vcombine.low %v386_v58, %v390_v9  ;;  %v3980_v20 = vcombine.low %v387_v10, %v391_v11  ;;  %v450_v9 = vld [vmem:[#allocation5 + $0xad0] sm:$0xff] }
 0x18f   :  { %v454_v10 = vld [vmem:[#allocation5 + $0xaf0] sm:$0xff]  ;;  %v451_v11 = vld [vmem:[#allocation5 + $0xad8] sm:$0xff] }
 0x191   :  { %2776 = vmatpush1.bf16.msra.mxu0 %v3922_v26  ;;  %2905 = vmatpush1.bf16.msra.mxu1 %v3924_v27  ;;  %v407_v26 = vld [vmem:[#allocation5 + $0x978] sm:$0xff]  ;;  %v3986_v27 = vcombine.low %v394_v16, %v398_v17  ;;  %v458_v17 = vld [vmem:[#allocation5 + $0xb10] sm:$0xff] }
 0x192   :  { %2777 = vmatprep.subr.bf16.mxu0 %v3931_v28  ;;  %2906 = vmatprep.subr.bf16.mxu1 %v3933_v29  ;;  %v3988_v28 = vcombine.low %v395_v25, %v399_v18  ;;  %v3995_v29 = vcombine.high %v402_v22, %v406_v23  ;;  %v3997_v31 = vcombine.high %v403_v24, %v407_v26 }
 0x195   :  { %2778 = vmatpush1.bf16.msra.mxu0 %v3930_v35  ;;  %2907 = vmatpush1.bf16.msra.mxu1 %v3932_v36  ;;  %v415_v35 = vld [vmem:[#allocation5 + $0x9b8] sm:$0xff]  ;;  %v3994_v36 = vcombine.low %v402_v22, %v406_v23  ;;  %v466_v23 = vld [vmem:[#allocation5 + $0xb50] sm:$0xff] }
 0x196   :  { %2779 = vmatprep.subr.bf16.mxu0 %v3939_v37  ;;  %2908 = vmatprep.subr.bf16.mxu1 %v3941_v38  ;;  %v3996_v37 = vcombine.low %v403_v24, %v407_v26  ;;  %v4003_v38 = vcombine.high %v410_v32, %v414_v33  ;;  %v4005_v40 = vcombine.high %v411_v34, %v415_v35  ;;  %v470_v24 = vld [vmem:[#allocation5 + $0xb70] sm:$0xff]  ;;  %v467_v26 = vld [vmem:[#allocation5 + $0xb58] sm:$0xff] }
 0x199   :  { %2780 = vmatpush1.bf16.msra.mxu0 %v3938_v45  ;;  %2909 = vmatpush1.bf16.msra.mxu1 %v3940_v46  ;;  %v423_v45 = vld [vmem:[#allocation5 + $0x9f8] sm:$0xff]  ;;  %v4002_v46 = vcombine.low %v410_v32, %v414_v33  ;;  %v474_v33 = vld [vmem:[#allocation5 + $0xb90] sm:$0xff] }
 0x19a   :  { %2781 = vmatprep.subr.bf16.mxu0 %v3947_v47  ;;  %2910 = vmatprep.subr.bf16.mxu1 %v3949_v48  ;;  %v4004_v47 = vcombine.low %v411_v34, %v415_v35  ;;  %v4011_v48 = vcombine.high %v418_v41, %v422_v43  ;;  %v4013_v49 = vcombine.high %v419_v44, %v423_v45  ;;  %v478_v34 = vld [vmem:[#allocation5 + $0xbb0] sm:$0xff]  ;;  %v475_v35 = vld [vmem:[#allocation5 + $0xb98] sm:$0xff] }
 0x19d   :  { %2782 = vmatpush1.bf16.msra.mxu0 %v3946_v53  ;;  %2911 = vmatpush1.bf16.msra.mxu1 %v3948_v54  ;;  %v431_v53 = vld [vmem:[#allocation5 + $0xa38] sm:$0xff]  ;;  %v4010_v54 = vcombine.low %v418_v41, %v422_v43  ;;  %v482_v43 = vld [vmem:[#allocation5 + $0xbd0] sm:$0xff] }
 0x19e   :  { %2794 = vmatprep.subr.bf16.mxu0 %v3955_v55  ;;  %2923 = vmatprep.subr.bf16.mxu1 %v3957_v56  ;;  %v4012_v55 = vcombine.low %v419_v44, %v423_v45  ;;  %v4019_v56 = vcombine.high %v426_v50, %v430_v51  ;;  %v4021_v57 = vcombine.high %v427_v52, %v431_v53  ;;  %v486_v44 = vld [vmem:[#allocation5 + $0xbf0] sm:$0xff]  ;;  %v483_v45 = vld [vmem:[#allocation5 + $0xbd8] sm:$0xff] }
 0x1a0   :  { %2784 = vmatmul.mubr.bf16.vlgmr.msra.gmra.mrb[4].mxu0 %v4613_v30  ;;  %2913 = vmatmul.mubr.bf16.vlgmr.msra.gmra.mrb[4].mxu1 %v4613_v30  ;;  %v3972_v30 = vcombine.low %v379_v4, %v383_v5  ;;  %v446_v4 = vld [vmem:[#allocation5 + $0xab0] sm:$0xff]  ;;  %v443_v5 = vld [vmem:[#allocation5 + $0xa98] sm:$0xff] }
 0x1a1   :  { %2795 = vmatpush1.bf16.msra.mxu0 %v3954_v62  ;;  %2924 = vmatpush1.bf16.msra.mxu1 %v3956_v63  ;;  %v439_v62 = vld [vmem:[#allocation5 + $0xa78] sm:$0xff]  ;;  %v4018_v63 = vcombine.low %v426_v50, %v430_v51  ;;  %v4074_v51 = vcombine.low %v482_v43, %v486_v44 }
 0x1a2   :  { %2796 = vmatprep.subr.bf16.mxu0 %v3963_v0  ;;  %2925 = vmatprep.subr.bf16.mxu1 %v3965_v1  ;;  %v4020_v0 = vcombine.low %v427_v52, %v431_v53  ;;  %v4027_v1 = vcombine.high %v434_v59, %v438_v60  ;;  %v4029_v2 = vcombine.high %v435_v61, %v439_v62  ;;  %v4293_v53 = vld [vmem:[#allocation8 + $0x40] sm:$0xff]  }
 0x1a3   :  { %2826 = vmatprep.mubr.bf16.mxu0 %v4615_v39  ;;  %2955 = vmatprep.mubr.bf16.mxu1 %v4615_v39  ;;  %v3989_v39 = vcombine.high %v395_v25, %v399_v18  ;;  %v462_v25 = vld [vmem:[#allocation5 + $0xb30] sm:$0xff]  ;;  %v459_v18 = vld [vmem:[#allocation5 + $0xb18] sm:$0xff] }
 0x1a5   :  { %2797 = vmatpush1.bf16.msra.mxu0 %v3962_v6  ;;  %2926 = vmatpush1.bf16.msra.mxu1 %v3964_v7  ;;  %v447_v6 = vld [vmem:[#allocation5 + $0xab8] sm:$0xff]  ;;  %v4026_v7 = vcombine.low %v434_v59, %v438_v60  ;;  %v4298_v59 = vld [vmem:[#allocation8 + $0xc8] sm:$0xff]  }
 0x1a6   :  { %2798 = vmatprep.subr.bf16.mxu0 %v3971_v8  ;;  %2927 = vmatprep.subr.bf16.mxu1 %v3973_v15  ;;  %v4028_v8 = vcombine.low %v435_v61, %v439_v62  ;;  %v4035_v15 = vcombine.high %v442_v3, %v446_v4  ;;  %v4037_v58 = vcombine.high %v443_v5, %v447_v6  ;;  %v4299_v60 = vld [vmem:[#allocation8 + $0x8] sm:$0xff]   ;;  %v4301_v62 = vld [vmem:[#allocation8 + $0x50] sm:$0xff]  }
 0x1a7   :  { %v4300_v61 = vld [vmem:[#allocation8 + $0x88] sm:$0xff]  }
 0x1a9   :  { %2799 = vmatpush1.bf16.msra.mxu0 %v3970_v12  ;;  %2928 = vmatpush1.bf16.msra.mxu1 %v3972_v30  ;;  %v455_v12 = vld [vmem:[#allocation5 + $0xaf8] sm:$0xff]  ;;  %v4034_v30 = vcombine.low %v442_v3, %v446_v4  ;;  %v4305_v3 = vld [vmem:[#allocation8 + $0x58] sm:$0xff]  }
 0x1aa   :  { %2800 = vmatprep.subr.bf16.mxu0 %v3979_v13  ;;  %2929 = vmatprep.subr.bf16.mxu1 %v3981_v14  ;;  %v4036_v13 = vcombine.low %v443_v5, %v447_v6  ;;  %v4043_v14 = vcombine.high %v450_v9, %v454_v10  ;;  %v4045_v16 = vcombine.high %v451_v11, %v455_v12  ;;  %v4306_v4 = vld [vmem:[#allocation8 + $0xd8] sm:$0xff]  }
 0x1ab   :  { %v4308_v6 = vld [vmem:[#allocation8 + $0x98] sm:$0xff]  }
 0x1ad   :  { %2801 = vmatpush1.bf16.msra.mxu0 %v3978_v19  ;;  %2930 = vmatpush1.bf16.msra.mxu1 %v3980_v20  ;;  %v463_v19 = vld [vmem:[#allocation5 + $0xb38] sm:$0xff]  ;;  %v4042_v20 = vcombine.low %v450_v9, %v454_v10  ;;  %v4640_v9 = vld [vmem:[#allocation7] sm:$0xff] }
 0x1ae   :  { %2802 = vmatprep.subr.bf16.mxu0 %v3987_v21  ;;  %2931 = vmatprep.subr.bf16.mxu1 %v3989_v39  ;;  %v4044_v21 = vcombine.low %v451_v11, %v455_v12  ;;  %v4051_v39 = vcombine.high %v458_v17, %v462_v25  ;;  %v4053_v22 = vcombine.high %v459_v18, %v463_v19  ;;  %v4312_v12 = vld [vmem:[#allocation8 + $0xa0] sm:$0xff]  }
 0x1b1   :  { %2803 = vmatpush1.bf16.msra.mxu0 %v3986_v27  ;;  %2932 = vmatpush1.bf16.msra.mxu1 %v3988_v28  ;;  %v471_v27 = vld [vmem:[#allocation5 + $0xb78] sm:$0xff]  ;;  %v4050_v28 = vcombine.low %v458_v17, %v462_v25 }
 0x1b2   :  { %2804 = vmatprep.subr.bf16.mxu0 %v3995_v29  ;;  %2933 = vmatprep.subr.bf16.mxu1 %v3997_v31  ;;  %v4052_v29 = vcombine.low %v459_v18, %v463_v19  ;;  %v4059_v31 = vcombine.high %v466_v23, %v470_v24  ;;  %v4061_v32 = vcombine.high %v467_v26, %v471_v27  ;;  %v4315_v18 = vld [vmem:[#allocation8 + $0x28] sm:$0xff]  }
 0x1b5   :  { %2805 = vmatpush1.bf16.msra.mxu0 %v3994_v36  ;;  %2934 = vmatpush1.bf16.msra.mxu1 %v3996_v37  ;;  %v479_v36 = vld [vmem:[#allocation5 + $0xbb8] sm:$0xff]  ;;  %v4058_v37 = vcombine.low %v466_v23, %v470_v24 }
 0x1b6   :  { %2806 = vmatprep.subr.bf16.mxu0 %v4003_v38  ;;  %2935 = vmatprep.subr.bf16.mxu1 %v4005_v40  ;;  %v4060_v38 = vcombine.low %v467_v26, %v471_v27  ;;  %v4067_v40 = vcombine.high %v474_v33, %v478_v34  ;;  %v4069_v41 = vcombine.high %v475_v35, %v479_v36 }
 0x1b9   :  { %2807 = vmatpush1.bf16.msra.mxu0 %v4002_v46  ;;  %2936 = vmatpush1.bf16.msra.mxu1 %v4004_v47  ;;  %v487_v46 = vld [vmem:[#allocation5 + $0xbf8] sm:$0xff]  ;;  %v4066_v47 = vcombine.low %v474_v33, %v478_v34 }
 0x1ba   :  { %2808 = vmatprep.subr.bf16.mxu0 %v4011_v48  ;;  %2937 = vmatprep.subr.bf16.mxu1 %v4013_v49  ;;  %v4068_v48 = vcombine.low %v475_v35, %v479_v36  ;;  %v4075_v49 = vcombine.high %v482_v43, %v486_v44  ;;  %v4077_v50 = vcombine.high %v483_v45, %v487_v46  ;;  %v4322_v44 = vld [vmem:[#allocation8 + $0xf8] sm:$0xff]  }
 0x1bb   :  { %v4076_v52 = vcombine.low %v483_v45, %v487_v46 }
 0x1bd   :  { %2809 = vmatpush1.bf16.msra.mxu0 %v4010_v54  ;;  %2938 = vmatpush1.bf16.msra.mxu1 %v4012_v55  ;;  %v4294_v54 = vld [vmem:[#allocation8 + $0xc0] sm:$0xff]  }
 0x1be   :  { %2810 = vmatprep.subr.bf16.mxu0 %v4019_v56  ;;  %2939 = vmatprep.subr.bf16.mxu1 %v4021_v57  ;;  %v4295_v55 = vld [vmem:[#allocation8] sm:$0xff]   ;;  %v4297_v57 = vld [vmem:[#allocation8 + $0x48] sm:$0xff]  }
 0x1bf   :  { %v4296_v56 = vld [vmem:[#allocation8 + $0x80] sm:$0xff]  }
 0x1c1   :  { %2811 = vmatpush1.bf16.msra.mxu0 %v4018_v63  ;;  %2940 = vmatpush1.bf16.msra.mxu1 %v4020_v0  ;;  %v4302_v63 = vld [vmem:[#allocation8 + $0xd0] sm:$0xff]   ;;  %v490_v0 = vlaneseq }
 0x1c2   :  { %2812 = vmatprep.subr.bf16.mxu0 %v4027_v1  ;;  %2941 = vmatprep.subr.bf16.mxu1 %v4029_v2  ;;  %v4303_v1 = vld [vmem:[#allocation8 + $0x10] sm:$0xff]  }
 0x1c3   :  { %v4304_v2 = vld [vmem:[#allocation8 + $0x90] sm:$0xff]   ;;  %v4637_v5 = vshrl.u32 %v490_v0, 7  ;;  %v4328_v0 = vld [vmem:[#allocation8 + $0x180] sm:$0xff]  }
 0x1c5   :  { %2813 = vmatpush1.bf16.msra.mxu0 %v4026_v7  ;;  %2942 = vmatpush1.bf16.msra.mxu1 %v4028_v8  ;;  %v4309_v7 = vld [vmem:[#allocation8 + $0x60] sm:$0xff]   ;;  %v500_v10 = vsub.s32 2, %v4637_v5  ;;  %v496_v11 = vsub.s32 1, %v4637_v5 }
 0x1c6   :  { %2814 = vmatprep.subr.bf16.mxu0 %v4035_v15  ;;  %2943 = vmatprep.subr.bf16.mxu1 %v4037_v58  ;;  %v4310_v8 = vld [vmem:[#allocation8 + $0xe0] sm:$0xff]   ;;  %v492_v15 = vsub.s32 0, %v4637_v5 }
 0x1c7   :  { %v4311_v58 = vld [vmem:[#allocation8 + $0x20] sm:$0xff]   ;;  %v501_v17 = vrot.slane %v4640_v9, %v500_v10  ;;  %v497_v25 = vrot.slane %v4640_v9, %v496_v11  ;;  %v4339_v10 = vld [vmem:[#allocation8 + $0x118] sm:$0xff]  }
 0x1c8   :  { %v4340_v11 = vld [vmem:[#allocation8 + $0x198] sm:$0xff]  }
 0x1c9   :  { %2815 = vmatpush1.bf16.msra.mxu0 %v4034_v30  ;;  %2944 = vmatpush1.bf16.msra.mxu1 %v4036_v13  ;;  %v504_v30 = vsub.s32 3, %v4637_v5  ;;  %v4313_v13 = vld [vmem:[#allocation8 + $0x68] sm:$0xff]  }
 0x1ca   :  { %2816 = vmatprep.subr.bf16.mxu0 %v4043_v14  ;;  %2945 = vmatprep.subr.bf16.mxu1 %v4045_v16  ;;  %v4314_v14 = vld [vmem:[#allocation8 + $0xe8] sm:$0xff]   ;;  %v493_v16 = vrot.slane %v4640_v9, %v492_v15  ;;  %v4337_v15 = vld [vmem:[#allocation8 + $0x158] sm:$0xff]  }
 0x1cb   :  { %v505_v19 = vrot.slane %v4640_v9, %v504_v30  ;;  %v4342_v30 = vld [vmem:[#allocation8 + $0x1e0] sm:$0xff]  }
 0x1cd   :  { %2817 = vmatpush1.bf16.msra.mxu0 %v4042_v20  ;;  %2946 = vmatpush1.bf16.msra.mxu1 %v4044_v21  ;;  %v4316_v20 = vld [vmem:[#allocation8 + $0xa8] sm:$0xff]   ;;  %v4317_v21 = vld [vmem:[#allocation8 + $0x70] sm:$0xff]  }
 0x1ce   :  { %2818 = vmatprep.subr.bf16.mxu0 %v4051_v39  ;;  %2947 = vmatprep.subr.bf16.mxu1 %v4053_v22  ;;  %v4318_v22 = vld [vmem:[#allocation8 + $0xf0] sm:$0xff]  }
 0x1d1   :  { %2819 = vmatpush1.bf16.msra.mxu0 %v4050_v28  ;;  %2948 = vmatpush1.bf16.msra.mxu1 %v4052_v29 }
 0x1d2   :  { %2820 = vmatprep.subr.bf16.mxu0 %v4059_v31  ;;  %2949 = vmatprep.subr.bf16.mxu1 %v4061_v32  ;;  %v4319_v32 = vld [vmem:[#allocation8 + $0x30] sm:$0xff]  }
 0x1d5   :  { %2821 = vmatpush1.bf16.msra.mxu0 %v4058_v37  ;;  %2950 = vmatpush1.bf16.msra.mxu1 %v4060_v38  ;;  %v4320_v37 = vld [vmem:[#allocation8 + $0xb0] sm:$0xff]   ;;  %v4321_v38 = vld [vmem:[#allocation8 + $0x78] sm:$0xff]  }
 0x1d6   :  { %2822 = vmatprep.subr.bf16.mxu0 %v4067_v40  ;;  %2951 = vmatprep.subr.bf16.mxu1 %v4069_v41 }
 0x1d9   :  { %2823 = vmatpush1.bf16.msra.mxu0 %v4066_v47  ;;  %2952 = vmatpush1.bf16.msra.mxu1 %v4068_v48 }
 0x1da   :  { %2824 = vmatprep.subr.bf16.mxu0 %v4075_v49  ;;  %2953 = vmatprep.subr.bf16.mxu1 %v4077_v50 }
 0x1dd   :  { %2825 = vmatpush1.bf16.msra.mxu0 %v4074_v51  ;;  %2954 = vmatpush1.bf16.msra.mxu1 %v4076_v52  ;;  %v4323_v52 = vld [vmem:[#allocation8 + $0x38] sm:$0xff]  }
 0x1de   :  { %4143 = vmatprep.subr.bf16.mxu0 %v4293_v53  ;;  %4165 = vmatprep.subr.bf16.mxu1 %v4294_v54 }
 0x1e0   :  { %2827 = vmatmul.mubr.bf16.vlgmr.msra.gmra.mrb[4].mxu0 %v4621_v42  ;;  %2956 = vmatmul.mubr.bf16.vlgmr.msra.gmra.mrb[4].mxu1 %v4621_v42  ;;  %v4307_v42 = vld [vmem:[#allocation8 + $0x18] sm:$0xff]  }
 0x1e1   :  { %4144 = vmatpush3.bf16.msra.mxu0 %v4295_v55  ;;  %4166 = vmatpush3.bf16.msra.mxu1 %v4296_v56  ;;  %v4324_v56 = vld [vmem:[#allocation8 + $0xb8] sm:$0xff]  }
 0x1e2   :  { %4145 = vmatprep.subr.bf16.mxu0 %v4297_v57  ;;  %4167 = vmatprep.subr.bf16.mxu1 %v4298_v59 }
 0x1e5   :  { %4146 = vmatpush3.bf16.msra.mxu0 %v4299_v60  ;;  %4168 = vmatpush3.bf16.msra.mxu1 %v4300_v61  ;;  %v4325_v60 = vld [vmem:[#allocation8 + $0x140] sm:$0xff]  }
 0x1e6   :  { %4147 = vmatprep.subr.bf16.mxu0 %v4301_v62  ;;  %4169 = vmatprep.subr.bf16.mxu1 %v4302_v63  ;;  %v4326_v61 = vld [vmem:[#allocation8 + $0x1c0] sm:$0xff]  }
 0x1e7   :  { %v4327_v63 = vld [vmem:[#allocation8 + $0x100] sm:$0xff]  }
 0x1e9   :  { %4148 = vmatpush3.bf16.msra.mxu0 %v4303_v1  ;;  %4170 = vmatpush3.bf16.msra.mxu1 %v4304_v2  ;;  %v4329_v1 = vld [vmem:[#allocation8 + $0x148] sm:$0xff]  }
 0x1ea   :  { %4149 = vmatprep.subr.bf16.mxu0 %v4305_v3  ;;  %4171 = vmatprep.subr.bf16.mxu1 %v4306_v4  ;;  %v4330_v2 = vld [vmem:[#allocation8 + $0x1c8] sm:$0xff]  }
 0x1eb   :  { %v4331_v3 = vld [vmem:[#allocation8 + $0x108] sm:$0xff]  }
 0x1ec   :  { %v4332_v4 = vld [vmem:[#allocation8 + $0x188] sm:$0xff]  }
 0x1ed   :  { %4150 = vmatpush3.bf16.msra.mxu0 %v4307_v42  ;;  %4172 = vmatpush3.bf16.msra.mxu1 %v4308_v6  ;;  %v4333_v42 = vld [vmem:[#allocation8 + $0x150] sm:$0xff]  }
 0x1ee   :  { %4151 = vmatprep.subr.bf16.mxu0 %v4309_v7  ;;  %4173 = vmatprep.subr.bf16.mxu1 %v4310_v8  ;;  %v4334_v6 = vld [vmem:[#allocation8 + $0x1d0] sm:$0xff]  }
 0x1ef   :  { %v4335_v7 = vld [vmem:[#allocation8 + $0x110] sm:$0xff]  }
 0x1f0   :  { %v4336_v8 = vld [vmem:[#allocation8 + $0x190] sm:$0xff]  }
 0x1f1   :  { %4152 = vmatpush3.bf16.msra.mxu0 %v4311_v58  ;;  %4174 = vmatpush3.bf16.msra.mxu1 %v4312_v12  ;;  %v4338_v58 = vld [vmem:[#allocation8 + $0x1d8] sm:$0xff]   ;;  %v4341_v12 = vld [vmem:[#allocation8 + $0x160] sm:$0xff]  }
 0x1f2   :  { %4153 = vmatprep.subr.bf16.mxu0 %v4313_v13  ;;  %4175 = vmatprep.subr.bf16.mxu1 %v4314_v14  ;;  %v4343_v13 = vld [vmem:[#allocation8 + $0x120] sm:$0xff]  }
 0x1f3   :  { %v2570_v39 = vpop.f32.mrb[0].mxu0  ;;  %v2699_v24 = vpop.f32.mrb[0].mxu1  ;;  %v4344_v14 = vld [vmem:[#allocation8 + $0x1a0] sm:$0xff]  }
 0x1f4   :  { %v4231_v23 = vadd.f32 %v2570_v39, %v493_v16  ;;  %v2572_v26 = vpop.f32.mrb[1].mxu0  ;;  %v4235_v27 = vadd.f32 %v2699_v24, %v501_v17  ;;  %v2701_v29 = vpop.f32.mrb[1].mxu1  ;;  %v4352_v39 = vld [vmem:[#allocation8 + $0x1b0] sm:$0xff]   ;;  %v4355_v24 = vld [vmem:[#allocation8 + $0x138] sm:$0xff]  }
 0x1f5   :  { %v4232_v28 = vadd.f32 %v2572_v26, %v497_v25  ;;  %v2574_v31 = vpop.f32.mrb[2].mxu0  ;;  %4154 = vmatpush3.bf16.msra.mxu0 %v4315_v18  ;;  %v4236_v33 = vadd.f32 %v2701_v29, %v505_v19  ;;  %v2703_v35 = vpop.f32.mrb[2].mxu1  ;;  %4176 = vmatpush3.bf16.msra.mxu1 %v4316_v20  ;;  %v4348_v18 = vld [vmem:[#allocation8 + $0x1a8] sm:$0xff]   ;;  %v4350_v20 = vld [vmem:[#allocation8 + $0x1f0] sm:$0xff]   ;;  %v4356_v26 = vld [vmem:[#allocation8 + $0x1b8] sm:$0xff]   ;;  %v512_v29 = vsub.s32 5, %v4637_v5 }
 0x1f6   :  { %v4233_v34 = vadd.f32 %v2574_v31, %v493_v16  ;;  %v2576_v36 = vpop.f32.mrb[3].mxu0  ;;  %4155 = vmatprep.subr.bf16.mxu0 %v4317_v21  ;;  %v4237_v40 = vadd.f32 %v2703_v35, %v501_v17  ;;  %v2705_v43 = vpop.f32.mrb[3].mxu1  ;;  %4177 = vmatprep.subr.bf16.mxu1 %v4318_v22  ;;  %v2966_v45 = vmax.f32 %v4231_v23, 0.0  ;;  %v2968_v48 = vmax.f32 %v4235_v27, 0.0  ;;  %v4345_v16 = vld [vmem:[#allocation8 + $0x168] sm:$0xff]   ;;  %v4351_v21 = vld [vmem:[#allocation8 + $0x130] sm:$0xff]  }
 0x1f7   :  { %v4234_v41 = vadd.f32 %v2576_v36, %v497_v25  ;;  %v4238_v47 = vadd.f32 %v2705_v43, %v505_v19  ;;  %v2967_v49 = vmax.f32 %v4232_v28, 0.0  ;;  %v2969_v53 = vmax.f32 %v4236_v33, 0.0  ;;  %v4346_v17 = vld [vmem:[#allocation8 + $0x1e8] sm:$0xff]   ;;  %v4349_v19 = vld [vmem:[#allocation8 + $0x170] sm:$0xff]   ;;  %v4353_v22 = vld [vmem:[#allocation8 + $0x178] sm:$0xff]  }
 0x1f8   :  { %v2974_v46 = vmax.f32 %v4233_v34, 0.0  ;;  %v2976_v50 = vmax.f32 %v4237_v40, 0.0  ;;  %v4347_v25 = vld [vmem:[#allocation8 + $0x128] sm:$0xff]   ;;  %v4354_v23 = vld [vmem:[#allocation8 + $0x1f8] sm:$0xff]   ;;  %v508_v27 = vsub.s32 4, %v4637_v5  ;;  %v516_v28 = vsub.s32 6, %v4637_v5 }
 0x1f9   :  { %v2975_v51 = vmax.f32 %v4234_v41, 0.0  ;;  %4156 = vmatpush3.bf16.msra.mxu0 %v4319_v32  ;;  %v2977_v55 = vmax.f32 %v4238_v47, 0.0  ;;  %4178 = vmatpush3.bf16.msra.mxu1 %v4320_v37  ;;  %v520_v31 = vsub.s32 7, %v4637_v5  ;;  %v513_v34 = vrot.slane %v4640_v9, %v512_v29 }
 0x1fa   :  { %v2982_v54 = vpack.c.bf16 %v2974_v46, %v2966_v45  ;;  %4157 = vmatprep.subr.bf16.mxu0 %v4321_v38  ;;  %v2984_v57 = vpack.c.bf16 %v2976_v50, %v2968_v48  ;;  %4179 = vmatprep.subr.bf16.mxu1 %v4322_v44  ;;  %v509_v32 = vrot.slane %v4640_v9, %v508_v27 }
 0x1fb   :  { %v2983_v59 = vpack.c.bf16 %v2975_v51, %v2967_v49  ;;  %v2985_v62 = vpack.c.bf16 %v2977_v55, %v2969_v53  ;;  %v517_v33 = vrot.slane %v4640_v9, %v516_v28  ;;  %v521_v35 = vrot.slane %v4640_v9, %v520_v31 }
 0x1fd   :  { %4158 = vmatpush3.bf16.msra.mxu0 %v4323_v52  ;;  %3541 = vmatprep.mubr.bf16.mxu0 %v2983_v59 }
 0x1fe   :  { %4180 = vmatpush3.bf16.msra.mxu1 %v4324_v56  ;;  %3582 = vmatprep.mubr.bf16.mxu1 %v2985_v62 }
 0x1ff   :  { %4187 = vmatprep.subr.bf16.mxu0 %v4325_v60  ;;  %4209 = vmatprep.subr.bf16.mxu1 %v4326_v61 }
 0x200   :  { %3542 = vmatmul.mubr.bf16.vlgmr.msra.gmra.mrb[8].mxu0 %v2982_v54 }
 0x201   :  { %3583 = vmatmul.mubr.bf16.vlgmr.msra.gmra.mrb[8].mxu1 %v2984_v57  ;;  %4188 = vmatpush3.bf16.msra.mxu0 %v4327_v63 }
 0x202   :  { %4210 = vmatpush3.bf16.msra.mxu1 %v4328_v0  ;;  %4189 = vmatprep.subr.bf16.mxu0 %v4329_v1 }
 0x203   :  { %4211 = vmatprep.subr.bf16.mxu1 %v4330_v2 }
 0x205   :  { %4190 = vmatpush3.bf16.msra.mxu0 %v4331_v3  ;;  %v4078_v3 = vld [vmem:[#allocation10] ss:$0 sm:$0xff] }
 0x206   :  { %4212 = vmatpush3.bf16.msra.mxu1 %v4332_v4  ;;  %4191 = vmatprep.subr.bf16.mxu0 %v4333_v42 }
 0x207   :  { %4213 = vmatprep.subr.bf16.mxu1 %v4334_v6 }
 0x209   :  { %4192 = vmatpush3.bf16.msra.mxu0 %v4335_v7 }
 0x20a   :  { %4214 = vmatpush3.bf16.msra.mxu1 %v4336_v8  ;;  %4193 = vmatprep.subr.bf16.mxu0 %v4337_v15 }
 0x20b   :  { %4215 = vmatprep.subr.bf16.mxu1 %v4338_v58 }
 0x20d   :  { %4194 = vmatpush3.bf16.msra.mxu0 %v4339_v10 }
 0x20e   :  { %4216 = vmatpush3.bf16.msra.mxu1 %v4340_v11  ;;  %4195 = vmatprep.subr.bf16.mxu0 %v4341_v12 }
 0x20f   :  { %4217 = vmatprep.subr.bf16.mxu1 %v4342_v30 }
 0x211   :  { %4196 = vmatpush3.bf16.msra.mxu0 %v4343_v13 }
 0x212   :  { %4218 = vmatpush3.bf16.msra.mxu1 %v4344_v14  ;;  %4197 = vmatprep.subr.bf16.mxu0 %v4345_v16 }
 0x213   :  { %4219 = vmatprep.subr.bf16.mxu1 %v4346_v17 }
 0x215   :  { %4198 = vmatpush3.bf16.msra.mxu0 %v4347_v25 }
 0x216   :  { %4220 = vmatpush3.bf16.msra.mxu1 %v4348_v18  ;;  %4199 = vmatprep.subr.bf16.mxu0 %v4349_v19 }
 0x217   :  { %4221 = vmatprep.subr.bf16.mxu1 %v4350_v20 }
 0x219   :  { %4200 = vmatpush3.bf16.msra.mxu0 %v4351_v21 }
 0x21a   :  { %4222 = vmatpush3.bf16.msra.mxu1 %v4352_v39  ;;  %4201 = vmatprep.subr.bf16.mxu0 %v4353_v22 }
 0x21b   :  { %4223 = vmatprep.subr.bf16.mxu1 %v4354_v23 }
 0x21d   :  { %4202 = vmatpush3.bf16.msra.mxu0 %v4355_v24 }
 0x21e   :  { %4224 = vmatpush3.bf16.msra.mxu1 %v4356_v26 }
 0x2b3   :  { %v2828_v36 = vpop.f32.mrb[4].mxu0  ;;  %v2957_v38 = vpop.f32.mrb[4].mxu1 }
 0x2b4   :  { %v4239_v37 = vadd.f32 %v2828_v36, %v509_v32  ;;  %v2830_v40 = vpop.f32.mrb[5].mxu0  ;;  %v4243_v41 = vadd.f32 %v2957_v38, %v517_v33  ;;  %v2959_v44 = vpop.f32.mrb[5].mxu1 }
 0x2b5   :  { %v4240_v43 = vadd.f32 %v2830_v40, %v513_v34  ;;  %v2832_v45 = vpop.f32.mrb[6].mxu0  ;;  %v4244_v46 = vadd.f32 %v2959_v44, %v521_v35  ;;  %v2961_v48 = vpop.f32.mrb[6].mxu1 }
 0x2b6   :  { %v4241_v47 = vadd.f32 %v2832_v45, %v509_v32  ;;  %v2834_v5 = vpop.f32.mrb[7].mxu0  ;;  %v4245_v49 = vadd.f32 %v2961_v48, %v517_v33  ;;  %v2963_v51 = vpop.f32.mrb[7].mxu1  ;;  %v2970_v52 = vmax.f32 %v4239_v37, 0.0  ;;  %v2972_v55 = vmax.f32 %v4243_v41, 0.0 }
 0x2b7   :  { %v4242_v50 = vadd.f32 %v2834_v5, %v513_v34  ;;  %v4246_v54 = vadd.f32 %v2963_v51, %v521_v35  ;;  %v2971_v9 = vmax.f32 %v4240_v43, 0.0  ;;  %v2973_v59 = vmax.f32 %v4244_v46, 0.0 }
 0x2b8   :  { %v2978_v53 = vmax.f32 %v4241_v47, 0.0  ;;  %v2980_v56 = vmax.f32 %v4245_v49, 0.0 }
 0x2b9   :  { %v2979_v57 = vmax.f32 %v4242_v50, 0.0  ;;  %v2981_v61 = vmax.f32 %v4246_v54, 0.0 }
 0x2ba   :  { %v2986_v60 = vpack.c.bf16 %v2978_v53, %v2970_v52  ;;  %v2988_v62 = vpack.c.bf16 %v2980_v56, %v2972_v55 }
 0x2bb   :  { %v2987_v63 = vpack.c.bf16 %v2979_v57, %v2971_v9  ;;  %v2989_v0 = vpack.c.bf16 %v2981_v61, %v2973_v59 }
 0x2bd   :  { %3623 = vmatprep.mubr.bf16.mxu0 %v2987_v63  ;;  %3664 = vmatprep.mubr.bf16.mxu1 %v2989_v0 }
 0x2be   :  { %3624 = vmatmul.mubr.bf16.vlgmr.msra.gmra.mrb[12].mxu0 %v2986_v60  ;;  %3665 = vmatmul.mubr.bf16.vlgmr.msra.gmra.mrb[12].mxu1 %v2988_v62 }
 0x2d3   :  { %v4159_v1 = vpop.f32.mrb[8].mxu0 }
 0x2d4   :  { %v4181_v2 = vpop.f32.mrb[8].mxu1  ;;  %v4160_v4 = vpop.f32.mrb[9].mxu0 }
 0x2d5   :  { %v4161_v42 = vadd.f32 %v4160_v4, %v4159_v1  ;;  %v4182_v6 = vpop.f32.mrb[9].mxu1  ;;  %v4162_v7 = vpop.f32.mrb[10].mxu0 }
 0x2d6   :  { %v4183_v8 = vadd.f32 %v4182_v6, %v4181_v2  ;;  %v4184_v15 = vpop.f32.mrb[10].mxu1  ;;  %v4163_v58 = vpop.f32.mrb[11].mxu0 }
 0x2d7   :  { %v3544_v10 = vadd.f32 %v4161_v42, %v4078_v3  ;;  %v4164_v11 = vadd.f32 %v4163_v58, %v4162_v7  ;;  %v4185_v12 = vpop.f32.mrb[11].mxu1 }
 0x2d8   :  { %v4186_v30 = vadd.f32 %v4185_v12, %v4184_v15 }
 0x2d9   :  { %v3585_v13 = vadd.f32 %v4183_v8, %v3544_v10  ;;  %v3547_v14 = vadd.f32 %v4164_v11, %v4078_v3 }
 0x2db   :  { %v3588_v16 = vadd.f32 %v4186_v30, %v3547_v14 }
 0x391   :  { %v4203_v17 = vpop.f32.mrb[12].mxu0  ;;  %v4225_v25 = vpop.f32.mrb[12].mxu1 }
 0x392   :  { %v4204_v18 = vpop.f32.mrb[13].mxu0  ;;  %v4226_v20 = vpop.f32.mrb[13].mxu1 }
 0x393   :  { %v4205_v19 = vadd.f32 %v4204_v18, %v4203_v17  ;;  %v4206_v21 = vpop.f32.mrb[14].mxu0  ;;  %v4227_v39 = vadd.f32 %v4226_v20, %v4225_v25  ;;  %v4228_v22 = vpop.f32.mrb[14].mxu1 }
 0x394   :  { %v4207_v23 = vpop.f32.mrb[15].mxu0  ;;  %v4229_v27 = vpop.f32.mrb[15].mxu1 }
 0x395   :  { %v3626_v24 = vadd.f32 %v4205_v19, %v3585_v13  ;;  %v4208_v26 = vadd.f32 %v4207_v23, %v4206_v21  ;;  %v4230_v28 = vadd.f32 %v4229_v27, %v4228_v22 }
 0x397   :  { %v3667_v29 = vadd.f32 %v4227_v39, %v3626_v24  ;;  %v3629_v31 = vadd.f32 %v4208_v26, %v3588_v16 }
 0x399   :  { %3673 = vst [vmem:[#allocation11] sm:$0xff] %v3667_v29  ;;  %v3670_v32 = vadd.f32 %v4230_v28, %v3629_v31 }
 0x39b   :  { %3674 = vst [vmem:[#allocation11 + $0x8] sm:$0xff] %v3670_v32 }
 0x39c   :  { %4478 = shalt.err (!%p4475_p2)
}
 0x39d   :  { %s4479_s8 = scalar_lea.hbm %s4674_s5, 256 }
 0x39e   :  { %p4480_p3 = scmp.ne.s32.totalorder %s4674_s5, %s4479_s8  ;;  %p4483_p4 = scmp.lt.u32.totalorder %s4479_s8, %s4674_s5 }
 0x3a0   :  { %p4485_p5 = pnand %p4483_p4, %p4480_p3 }
 0x3a2   :  { %4488 = shalt.err (!%p4485_p5)
}
 0x3a3   :  { %s4509_s13 = smov 128   ;;  %s4510_s14 = smov 8  }
 0x3a4   :  { %3686 = dma.vmem_to_hbm [thread:$0]  %s3681_s3, 256, %s4674_s5, [#allocation4], %s4509_s13, %s4509_s13, %s4510_s14  }
 0x3a5   :  { %4495 = dma.done.wait [#allocation4], 256  }
 0x3a6   :  { %4496 = vsyncadd [#allocation4], 4294967040 }
 0x3a7   :  { %3690 = vsyncpa [#allocation3], 1 }
 0x3a8   :  { %3691 = vsyncpa [#allocation6], 1 }
 0x3a9   :  { %3692 = vsyncpa [#allocation9], 1 }
 0x3aa   :  { %3693 = vsyncpa [#allocation4], 1 }

</bundles_post_ra>
